<compile_context>
chip_gen: v7x
topology: tpu7x:2x2x1
jax: 0.10.0
libtpu: 0.0.40
codegen_flags: <defaults>
</compile_context>

<pallas_src>
import functools

import jax
import jax.numpy as jnp
from jax import lax
from jax.experimental import pallas as pl
from jax.experimental.pallas import tpu as pltpu


def _relu_conv_kernel(x_ref, w_ref, y_ref, stats_ref, xp_ref, patch_ref, *,
                      Nb, C_in, C_out, K, stride, padding, H, W, Ho, Wo):
    # x_ref    : (Nb, C_in, H, W)              VMEM  pipelined batch slice
    # w_ref    : (C_out, C_in*K*K)             VMEM  im2col-ready weight slab
    # y_ref    : (C_out, Nb*Ho*Wo)             VMEM  lane-dense conv output
    # stats_ref: (1, C_out, 2)                 VMEM  per-step [sum, sum_sq]
    # xp_ref   : (C_in*Nb, Hp, Wp)             VMEM  padded, ReLU'd input
    # patch_ref: (C_in*K*K, Nb*Ho*Wo)          VMEM  im2col patch matrix
    xb = x_ref[...]                                    # (Nb, C_in, H, W)
    if Nb == 1:
        xb = xb.reshape(C_in, H, W)                    # free (size-1 leading axis)
    else:
        xb = jnp.transpose(xb, (1, 0, 2, 3)).reshape(C_in * Nb, H, W)
    relu_x = jnp.maximum(xb, 0.0)                      # ReLU fused; ReLU(0)==0 so
                                                       # pad-then-ReLU == ReLU-then-pad
    if padding > 0:
        Hp, Wp = H + 2 * padding, W + 2 * padding
        # Zero only the halo; the interior is fully overwritten below.
        zrow = jnp.zeros((C_in * Nb, padding, Wp), jnp.float32)
        xp_ref[:, :padding, :] = zrow
        xp_ref[:, padding + H:, :] = zrow
        zcol = jnp.zeros((C_in * Nb, Hp, padding), jnp.float32)
        xp_ref[:, :, :padding] = zcol
        xp_ref[:, :, padding + W:] = zcol
        xp_ref[:, padding:padding + H, padding:padding + W] = relu_x
        xp = xp_ref[...]
    else:
        xp = relu_x                                    # no scratch round trip needed

    # im2col: one strided slice + one store per tap into the patch matrix.
    L = Nb * Ho * Wo
    for kh in range(K):
        for kw in range(K):
            t = kh * K + kw
            sl = xp[:, kh:kh + (Ho - 1) * stride + 1:stride,
                       kw:kw + (Wo - 1) * stride + 1:stride]   # (C_in*Nb, Ho, Wo)
            patch_ref[t * C_in * Nb:(t + 1) * C_in * Nb, :] = sl.reshape(
                C_in * Nb, Ho * Wo).reshape(C_in * Nb, -1) if Nb == 1 else \
                sl.reshape(C_in * Nb, Ho * Wo)
    # (note: for Nb==1 both branches are identical; kept explicit for clarity)

    # Single MXU matmul: (C_out, C_in*K*K) @ (C_in*K*K, Nb*Ho*Wo).
    y = jnp.dot(w_ref[...], patch_ref[...], preferred_element_type=jnp.float32)
    y_ref[...] = y

    # Per-step partial BatchNorm statistics (per-channel sum and sum of squares).
    s1 = jnp.sum(y, axis=-1, keepdims=True)            # (C_out, 1)
    s2 = jnp.sum(y * y, axis=-1, keepdims=True)        # (C_out, 1)
    stats_ref[0] = jnp.concatenate([s1, s2], axis=-1)  # (C_out, 2)


def _bn_kernel(y_ref, stats_ref, gamma_ref, beta_ref, o_ref, *, eps, inv_count):
    # y_ref    : (C_out, Ho*Wo)   lane-dense slice for one batch element
    # stats_ref: (G, C_out, 2)    per-step partial [sum, sum_sq] from kernel 1
    # o_ref    : (1, C_out, Ho*Wo) -> wrapper reshape to NCHW is free
    s = jnp.sum(stats_ref[...], axis=0)                        # (C_out, 2)
    mean = s[:, 0:1] * inv_count                               # (C_out, 1)
    var = jnp.maximum(s[:, 1:2] * inv_count - mean * mean, 0.0)  # biased, clamped
    scale = gamma_ref[...] * lax.rsqrt(var + eps)              # rsqrt -> EUP
    shift = beta_ref[...] - mean * scale
    o_ref[0] = y_ref[...] * scale + shift


def _choose_nb(N, per_elem_bytes, vmem_budget=24 << 20):
    """Batch elements per grid step: as large as fits, but keep grid >= 2 steps
    (so both v7x TensorCores get work)."""
    if N < 2:
        return max(N, 1)
    best = 1
    for nb in range(1, N // 2 + 1):
        if N % nb == 0 and nb * per_elem_bytes <= vmem_budget:
            best = nb
    return best


def relu_conv_bn_forward(x, w, gamma, beta, *, stride, padding, eps=1e-5):
    """x: (N, C_in, H, W) NCHW. w: (C_out, C_in, K, K). Returns (N, C_out, Ho, Wo)."""
    N, C_in, H, W = x.shape
    C_out, _, K, _ = w.shape
    Ho = (H + 2 * padding - K) // stride + 1
    Wo = (W + 2 * padding - K) // stride + 1
    Hp, Wp = H + 2 * padding, W + 2 * padding

    x = x.astype(jnp.float32)
    # (C_out, C_in, K, K) -> (C_out, K*K*C_in), tap-major / channel-minor, matching
    # the patch-matrix row order built in-kernel.
    w_mat = jnp.transpose(w.astype(jnp.float32), (0, 2, 3, 1)).reshape(
        C_out, K * K * C_in)

    # Rough per-batch-element VMEM footprint (double-buffered in/out + scratch).
    per_elem = 4 * (2 * C_in * H * W + 2 * C_out * Ho * Wo
                    + C_in * K * K * Ho * Wo + C_in * Hp * Wp)
    Nb = _choose_nb(N, per_elem)
    G = N // Nb

    conv_kernel = functools.partial(
        _relu_conv_kernel, Nb=Nb, C_in=C_in, C_out=C_out, K=K, stride=stride,
        padding=padding, H=H, W=W, Ho=Ho, Wo=Wo)

    # Kernel 1: ReLU + im2col + single-matmul conv, batch-parallel grid,
    # lane-dense (C_out, N*Ho*Wo) output + per-step partial BN statistics.
    y, stats = pl.pallas_call(
        conv_kernel,
        out_shape=(jax.ShapeDtypeStruct((C_out, N * Ho * Wo), jnp.float32),
                   jax.ShapeDtypeStruct((G, C_out, 2), jnp.float32)),
        grid_spec=pltpu.PrefetchScalarGridSpec(
            num_scalar_prefetch=0,
            grid=(G,),
            in_specs=[
                pl.BlockSpec((Nb, C_in, H, W), lambda g: (g, 0, 0, 0)),
                pl.BlockSpec((C_out, K * K * C_in), lambda g: (0, 0)),
            ],
            out_specs=[
                pl.BlockSpec((C_out, Nb * Ho * Wo), lambda g: (0, g)),
                pl.BlockSpec((1, C_out, 2), lambda g: (g, 0, 0)),
            ],
            scratch_shapes=[
                pltpu.VMEM((C_in * Nb, Hp, Wp), jnp.float32),
                pltpu.VMEM((C_in * K * K, Nb * Ho * Wo), jnp.float32),
            ],
        ),
        compiler_params=pltpu.CompilerParams(
            dimension_semantics=("parallel",)),
    )(x, w_mat)

    # Kernel 2: gridded BatchNorm normalize. Stats come from the fused partial
    # sums (y is read exactly once here). Output blocks are (1, C_out, Ho*Wo)
    # so the final NCHW conversion below is a free reshape, not a transpose.
    bn_kernel = functools.partial(
        _bn_kernel, eps=eps, inv_count=1.0 / float(N * Ho * Wo))
    out_flat = pl.pallas_call(
        bn_kernel,
        out_shape=jax.ShapeDtypeStruct((N, C_out, Ho * Wo), jnp.float32),
        grid_spec=pltpu.PrefetchScalarGridSpec(
            num_scalar_prefetch=0,
            grid=(N,),
            in_specs=[
                pl.BlockSpec((C_out, Ho * Wo), lambda n: (0, n)),
                pl.BlockSpec((G, C_out, 2), lambda n: (0, 0, 0)),
                pl.BlockSpec((C_out, 1), lambda n: (0, 0)),
                pl.BlockSpec((C_out, 1), lambda n: (0, 0)),
            ],
            out_specs=pl.BlockSpec((1, C_out, Ho * Wo), lambda n: (n, 0, 0)),
        ),
        compiler_params=pltpu.CompilerParams(
            dimension_semantics=("parallel",)),
    )(y, stats,
      gamma.astype(jnp.float32).reshape(C_out, 1),
      beta.astype(jnp.float32).reshape(C_out, 1))

    # Free reshape (no data movement) back to NCHW.
    return out_flat.reshape(N, C_out, Ho, Wo)


def _reference(x, w, gamma, beta, *, stride, padding, eps=1e-5):
    xr = jnp.maximum(x, 0.0)
    y = lax.conv_general_dilated(
        xr, w, window_strides=(stride, stride),
        padding=[(padding, padding), (padding, padding)],
        dimension_numbers=("NCHW", "OIHW", "NCHW"))
    mean = y.mean(axis=(0, 2, 3), keepdims=True)
    var = ((y - mean) ** 2).mean(axis=(0, 2, 3), keepdims=True)
    return (gamma.reshape(1, -1, 1, 1) * (y - mean) / jnp.sqrt(var + eps)
            + beta.reshape(1, -1, 1, 1))


if __name__ == "__main__":
    # ReLUConvBN(C_in=4, C_out=8, kernel_size=3, stride=1, padding=1)
    N, C_in, H, W = 2, 4, 16, 16
    C_out, K, stride, padding = 8, 3, 1, 1

    key = jax.random.PRNGKey(0)
    kx, kw = jax.random.split(key, 2)
    x = jax.random.normal(kx, (N, C_in, H, W), jnp.float32)
    w = 0.1 * jax.random.normal(kw, (C_out, C_in, K, K), jnp.float32)
    gamma = jnp.ones((C_out,), jnp.float32)   # BatchNorm2d affine defaults
    beta = jnp.zeros((C_out,), jnp.float32)

    out = relu_conv_bn_forward(x, w, gamma, beta, stride=stride, padding=padding)
    out = jax.block_until_ready(out)

    ref = _reference(x, w, gamma, beta, stride=stride, padding=padding)
    Ho = (H + 2 * padding - K) // stride + 1
    Wo = (W + 2 * padding - K) // stride + 1
    assert out.shape == (N, C_out, Ho, Wo)
    err = float(jnp.max(jnp.abs(out - ref)))
    assert jnp.allclose(out, ref, atol=1e-4, rtol=1e-4), err
    print("KERNEL_OK")
</pallas_src>

<mosaic_0001>
module attributes {stable_mosaic.version = 11 : i64} {
  func.func @_relu_conv_kernel(%arg0: i32, %arg1: memref<1x4x16x16xf32, #tpu.memory_space<vmem>>, %arg2: memref<8x36xf32, #tpu.memory_space<vmem>>, %arg3: memref<8x256xf32, #tpu.memory_space<vmem>>, %arg4: memref<1x8x2xf32, #tpu.memory_space<vmem>>, %arg5: memref<4x18x18xf32, #tpu.memory_space<vmem>>, %arg6: memref<36x256xf32, #tpu.memory_space<vmem>>) attributes {dimension_semantics = [#tpu.dimension_semantics<parallel>], iteration_bounds = array<i64: 2>, scalar_prefetch = 0 : i64, scratch_operands = 2 : i64, tpu.core_type = #tpu.core_type<tc>, window_params = [{transform_indices = @transform_0, window_bounds = array<i64: 1, 4, 16, 16>}, {pipeline_mode = #tpu.pipeline_mode<synchronous>, transform_indices = @transform_1, window_bounds = array<i64: 8, 36>}, {transform_indices = @transform_2, window_bounds = array<i64: 8, 256>}, {transform_indices = @transform_3, window_bounds = array<i64: 1, 8, 2>}]} {
    %c0 = arith.constant 0 : index
    %c0_0 = arith.constant 0 : index
    %c0_1 = arith.constant 0 : index
    %c0_2 = arith.constant 0 : index
    %0 = vector.load %arg1[%c0, %c0_0, %c0_1, %c0_2] : memref<1x4x16x16xf32, #tpu.memory_space<vmem>>, vector<1x4x16x16xf32>
    %1 = vector.shape_cast %0 : vector<1x4x16x16xf32> to vector<4x16x16xf32>
    %cst = arith.constant 0.000000e+00 : f32
    %2 = vector.broadcast %cst : f32 to vector<4x16x16xf32>
    %3 = arith.maximumf %1, %2 : vector<4x16x16xf32>
    %cst_3 = arith.constant 0.000000e+00 : f32
    %4 = vector.broadcast %cst_3 : f32 to vector<4x1x18xf32>
    %c0_4 = arith.constant 0 : index
    %c0_5 = arith.constant 0 : index
    %c0_6 = arith.constant 0 : index
    %5 = vector.load %arg5[%c0_4, %c0_5, %c0_6] : memref<4x18x18xf32, #tpu.memory_space<vmem>>, vector<4x1x18xf32>
    tpu.vector_store %arg5[%c0_4, %c0_5, %c0_6], %4 {strides = array<i32>} : memref<4x18x18xf32, #tpu.memory_space<vmem>>, vector<4x1x18xf32>,
    %c0_7 = arith.constant 0 : index
    %c17 = arith.constant 17 : index
    %c0_8 = arith.constant 0 : index
    %6 = vector.load %arg5[%c0_7, %c17, %c0_8] : memref<4x18x18xf32, #tpu.memory_space<vmem>>, vector<4x1x18xf32>
    tpu.vector_store %arg5[%c0_7, %c17, %c0_8], %4 {strides = array<i32>} : memref<4x18x18xf32, #tpu.memory_space<vmem>>, vector<4x1x18xf32>,
    %cst_9 = arith.constant 0.000000e+00 : f32
    %7 = vector.broadcast %cst_9 : f32 to vector<4x18x1xf32>
    %c0_10 = arith.constant 0 : index
    %c0_11 = arith.constant 0 : index
    %c0_12 = arith.constant 0 : index
    %8 = vector.load %arg5[%c0_10, %c0_11, %c0_12] : memref<4x18x18xf32, #tpu.memory_space<vmem>>, vector<4x18x1xf32>
    tpu.vector_store %arg5[%c0_10, %c0_11, %c0_12], %7 {strides = array<i32>} : memref<4x18x18xf32, #tpu.memory_space<vmem>>, vector<4x18x1xf32>,
    %c0_13 = arith.constant 0 : index
    %c0_14 = arith.constant 0 : index
    %c17_15 = arith.constant 17 : index
    %9 = vector.load %arg5[%c0_13, %c0_14, %c17_15] : memref<4x18x18xf32, #tpu.memory_space<vmem>>, vector<4x18x1xf32>
    tpu.vector_store %arg5[%c0_13, %c0_14, %c17_15], %7 {strides = array<i32>} : memref<4x18x18xf32, #tpu.memory_space<vmem>>, vector<4x18x1xf32>,
    %c0_16 = arith.constant 0 : index
    %c1 = arith.constant 1 : index
    %c1_17 = arith.constant 1 : index
    %10 = vector.load %arg5[%c0_16, %c1, %c1_17] : memref<4x18x18xf32, #tpu.memory_space<vmem>>, vector<4x16x16xf32>
    tpu.vector_store %arg5[%c0_16, %c1, %c1_17], %3 {strides = array<i32>} : memref<4x18x18xf32, #tpu.memory_space<vmem>>, vector<4x16x16xf32>,
    %c0_18 = arith.constant 0 : index
    %c0_19 = arith.constant 0 : index
    %c0_20 = arith.constant 0 : index
    %11 = vector.load %arg5[%c0_18, %c0_19, %c0_20] : memref<4x18x18xf32, #tpu.memory_space<vmem>>, vector<4x18x18xf32>
    %12 = vector.extract_strided_slice %11 {offsets = [0, 0, 0], sizes = [4, 16, 16], strides = [1, 1, 1]} : vector<4x18x18xf32> to vector<4x16x16xf32>
    %13 = vector.shape_cast %12 : vector<4x16x16xf32> to vector<4x256xf32>
    %c0_21 = arith.constant 0 : index
    %c0_22 = arith.constant 0 : index
    %14 = vector.load %arg6[%c0_21, %c0_22] : memref<36x256xf32, #tpu.memory_space<vmem>>, vector<4x256xf32>
    tpu.vector_store %arg6[%c0_21, %c0_22], %13 {strides = array<i32>} : memref<36x256xf32, #tpu.memory_space<vmem>>, vector<4x256xf32>,
    %15 = vector.extract_strided_slice %11 {offsets = [0, 0, 1], sizes = [4, 16, 16], strides = [1, 1, 1]} : vector<4x18x18xf32> to vector<4x16x16xf32>
    %16 = vector.shape_cast %15 : vector<4x16x16xf32> to vector<4x256xf32>
    %c4 = arith.constant 4 : index
    %c0_23 = arith.constant 0 : index
    %17 = vector.load %arg6[%c4, %c0_23] : memref<36x256xf32, #tpu.memory_space<vmem>>, vector<4x256xf32>
    tpu.vector_store %arg6[%c4, %c0_23], %16 {strides = array<i32>} : memref<36x256xf32, #tpu.memory_space<vmem>>, vector<4x256xf32>,
    %18 = vector.extract_strided_slice %11 {offsets = [0, 0, 2], sizes = [4, 16, 16], strides = [1, 1, 1]} : vector<4x18x18xf32> to vector<4x16x16xf32>
    %19 = vector.shape_cast %18 : vector<4x16x16xf32> to vector<4x256xf32>
    %c8 = arith.constant 8 : index
    %c0_24 = arith.constant 0 : index
    %20 = vector.load %arg6[%c8, %c0_24] : memref<36x256xf32, #tpu.memory_space<vmem>>, vector<4x256xf32>
    tpu.vector_store %arg6[%c8, %c0_24], %19 {strides = array<i32>} : memref<36x256xf32, #tpu.memory_space<vmem>>, vector<4x256xf32>,
    %21 = vector.extract_strided_slice %11 {offsets = [0, 1, 0], sizes = [4, 16, 16], strides = [1, 1, 1]} : vector<4x18x18xf32> to vector<4x16x16xf32>
    %22 = vector.shape_cast %21 : vector<4x16x16xf32> to vector<4x256xf32>
    %c12 = arith.constant 12 : index
    %c0_25 = arith.constant 0 : index
    %23 = vector.load %arg6[%c12, %c0_25] : memref<36x256xf32, #tpu.memory_space<vmem>>, vector<4x256xf32>
    tpu.vector_store %arg6[%c12, %c0_25], %22 {strides = array<i32>} : memref<36x256xf32, #tpu.memory_space<vmem>>, vector<4x256xf32>,
    %24 = vector.extract_strided_slice %11 {offsets = [0, 1, 1], sizes = [4, 16, 16], strides = [1, 1, 1]} : vector<4x18x18xf32> to vector<4x16x16xf32>
    %25 = vector.shape_cast %24 : vector<4x16x16xf32> to vector<4x256xf32>
    %c16 = arith.constant 16 : index
    %c0_26 = arith.constant 0 : index
    %26 = vector.load %arg6[%c16, %c0_26] : memref<36x256xf32, #tpu.memory_space<vmem>>, vector<4x256xf32>
    tpu.vector_store %arg6[%c16, %c0_26], %25 {strides = array<i32>} : memref<36x256xf32, #tpu.memory_space<vmem>>, vector<4x256xf32>,
    %27 = vector.extract_strided_slice %11 {offsets = [0, 1, 2], sizes = [4, 16, 16], strides = [1, 1, 1]} : vector<4x18x18xf32> to vector<4x16x16xf32>
    %28 = vector.shape_cast %27 : vector<4x16x16xf32> to vector<4x256xf32>
    %c20 = arith.constant 20 : index
    %c0_27 = arith.constant 0 : index
    %29 = vector.load %arg6[%c20, %c0_27] : memref<36x256xf32, #tpu.memory_space<vmem>>, vector<4x256xf32>
    tpu.vector_store %arg6[%c20, %c0_27], %28 {strides = array<i32>} : memref<36x256xf32, #tpu.memory_space<vmem>>, vector<4x256xf32>,
    %30 = vector.extract_strided_slice %11 {offsets = [0, 2, 0], sizes = [4, 16, 16], strides = [1, 1, 1]} : vector<4x18x18xf32> to vector<4x16x16xf32>
    %31 = vector.shape_cast %30 : vector<4x16x16xf32> to vector<4x256xf32>
    %c24 = arith.constant 24 : index
    %c0_28 = arith.constant 0 : index
    %32 = vector.load %arg6[%c24, %c0_28] : memref<36x256xf32, #tpu.memory_space<vmem>>, vector<4x256xf32>
    tpu.vector_store %arg6[%c24, %c0_28], %31 {strides = array<i32>} : memref<36x256xf32, #tpu.memory_space<vmem>>, vector<4x256xf32>,
    %33 = vector.extract_strided_slice %11 {offsets = [0, 2, 1], sizes = [4, 16, 16], strides = [1, 1, 1]} : vector<4x18x18xf32> to vector<4x16x16xf32>
    %34 = vector.shape_cast %33 : vector<4x16x16xf32> to vector<4x256xf32>
    %c28 = arith.constant 28 : index
    %c0_29 = arith.constant 0 : index
    %35 = vector.load %arg6[%c28, %c0_29] : memref<36x256xf32, #tpu.memory_space<vmem>>, vector<4x256xf32>
    tpu.vector_store %arg6[%c28, %c0_29], %34 {strides = array<i32>} : memref<36x256xf32, #tpu.memory_space<vmem>>, vector<4x256xf32>,
    %36 = vector.extract_strided_slice %11 {offsets = [0, 2, 2], sizes = [4, 16, 16], strides = [1, 1, 1]} : vector<4x18x18xf32> to vector<4x16x16xf32>
    %37 = vector.shape_cast %36 : vector<4x16x16xf32> to vector<4x256xf32>
    %c32 = arith.constant 32 : index
    %c0_30 = arith.constant 0 : index
    %38 = vector.load %arg6[%c32, %c0_30] : memref<36x256xf32, #tpu.memory_space<vmem>>, vector<4x256xf32>
    tpu.vector_store %arg6[%c32, %c0_30], %37 {strides = array<i32>} : memref<36x256xf32, #tpu.memory_space<vmem>>, vector<4x256xf32>,
    %c0_31 = arith.constant 0 : index
    %c0_32 = arith.constant 0 : index
    %39 = vector.load %arg2[%c0_31, %c0_32] : memref<8x36xf32, #tpu.memory_space<vmem>>, vector<8x36xf32>
    %c0_33 = arith.constant 0 : index
    %c0_34 = arith.constant 0 : index
    %40 = vector.load %arg6[%c0_33, %c0_34] : memref<36x256xf32, #tpu.memory_space<vmem>>, vector<36x256xf32>
    %cst_35 = arith.constant dense<0.000000e+00> : vector<8x256xf32>
    %41 = tpu.matmul %39, %40, %cst_35 {dimension_numbers = #tpu.dot_dimension_numbers<[1], [0], [0], [1], [0, 0, 1, 1], [], []>} : vector<8x36xf32>, vector<36x256xf32>, vector<8x256xf32> -> vector<8x256xf32>
    %c0_36 = arith.constant 0 : index
    %c0_37 = arith.constant 0 : index
    %42 = vector.load %arg3[%c0_36, %c0_37] : memref<8x256xf32, #tpu.memory_space<vmem>>, vector<8x256xf32>
    tpu.vector_store %arg3[%c0_36, %c0_37], %41 {strides = array<i32>} : memref<8x256xf32, #tpu.memory_space<vmem>>, vector<8x256xf32>,
    %cst_38 = arith.constant dense<0.000000e+00> : vector<8xf32>
    %43 = vector.multi_reduction <add>, %41, %cst_38 [1] : vector<8x256xf32> to vector<8xf32>
    %44 = vector.shape_cast %43 : vector<8xf32> to vector<8x1xf32>
    %45 = arith.mulf %41, %41 : vector<8x256xf32>
    %cst_39 = arith.constant dense<0.000000e+00> : vector<8xf32>
    %46 = vector.multi_reduction <add>, %45, %cst_39 [1] : vector<8x256xf32> to vector<8xf32>
    %47 = vector.shape_cast %46 : vector<8xf32> to vector<8x1xf32>
    %48 = tpu.concatenate %44, %47 in 1 : vector<8x1xf32>, vector<8x1xf32> -> vector<8x2xf32>
    %c0_40 = arith.constant 0 : index
    %c0_41 = arith.constant 0 : index
    %c0_42 = arith.constant 0 : index
    %49 = vector.load %arg4[%c0_40, %c0_41, %c0_42] : memref<1x8x2xf32, #tpu.memory_space<vmem>>, vector<1x8x2xf32>
    %50 = vector.shape_cast %49 : vector<1x8x2xf32> to vector<8x2xf32>
    %51 = vector.shape_cast %48 : vector<8x2xf32> to vector<1x8x2xf32>
    tpu.vector_store %arg4[%c0_40, %c0_41, %c0_42], %51 {strides = array<i32>} : memref<1x8x2xf32, #tpu.memory_space<vmem>>, vector<1x8x2xf32>,
    return
  }
  func.func @transform_0(%arg0: i32) -> (i32, i32, i32, i32) {
    %c0_i32 = arith.constant 0 : i32
    %c0_i32_0 = arith.constant 0 : i32
    %c0_i32_1 = arith.constant 0 : i32
    %c0_i32_2 = arith.constant 0 : i32
    return %arg0, %c0_i32, %c0_i32_0, %c0_i32_1 : i32, i32, i32, i32
  }
  func.func @transform_1(%arg0: i32) -> (i32, i32) {
    %c0_i32 = arith.constant 0 : i32
    %c0_i32_0 = arith.constant 0 : i32
    %c0_i32_1 = arith.constant 0 : i32
    return %c0_i32, %c0_i32_0 : i32, i32
  }
  func.func @transform_2(%arg0: i32) -> (i32, i32) {
    %c0_i32 = arith.constant 0 : i32
    %c0_i32_0 = arith.constant 0 : i32
    return %c0_i32, %arg0 : i32, i32
  }
  func.func @transform_3(%arg0: i32) -> (i32, i32, i32) {
    %c0_i32 = arith.constant 0 : i32
    %c0_i32_0 = arith.constant 0 : i32
    %c0_i32_1 = arith.constant 0 : i32
    return %arg0, %c0_i32, %c0_i32_0 : i32, i32, i32
  }
}

</mosaic_0001>

<bundles_post_ra>
// kernel: tpu_custom_call.1
= control target key start
LH: loop header
LB: loop body
LE: loop exit
PB: predicated region body
PF: predicated region fallthrough
CT: control target
= control target key end

     0   :  { %9 = vsyncpa [#allocation5], 0  ;;  %s4568_s0 = inlined_call_operand.hbm [shape: f32[2,4,16,16], index: 0, kind: input, shape index: {}]   ;;  %s4569_s1 = inlined_call_operand.hbm [shape: f32[8,36], index: 1, kind: input, shape index: {}]   ;;  %s4570_s2 = inlined_call_operand.hbm [shape: f32[8,512], index: 2, kind: output, shape index: {0}]   ;;  %s4571_s3 = inlined_call_operand.vmem [shape: f32[2,8,2], index: 3, kind: output, shape index: {1}]  }
   0x1   :  { %11 = vsyncpa [#allocation5 + $0x1], 0 }
   0x2   :  { %12 = vsyncpa [#allocation8], 0 }
   0x3   :  { %13 = vsyncpa [#allocation6], 0 }
   0x4   :  { %15 = vsyncpa [#allocation6 + $0x1], 0  ;;  %s2947_s12 = smov 0   ;;  %s2949_s13 = smov 0  }
   0x5   :  { %s2951_s14 = smov 0   ;;  %s2953_s15 = smov 0  }
   0x6 LB: > { %s2968_s16 = sadd.s32 4294967295, %s2907_s15   ;;  %s2669_s17 = sadd.s32 4294967294, %s2907_s15   ;;  %s2907_s15 = sphi %s2953_s15, %s4669_s15   ;;  %s2903_s14 = sphi %s2951_s14, %s4668_s14   ;;  %s2899_s13 = sphi %s2949_s13, %s4667_s13   ;;  %s2895_s12 = sphi %s2947_s12, %s4666_s12  }
   0x7   : > { %s2972_s18 = sadd.s32 1, %s2907_s15   ;;  %s28_s19 = sadd.s32 1, %s2903_s14 }
   0x8   : > { %s25_s20 = ssub.s32 %s2907_s15, %s2972_s18  ;;  %p35_p0 = scmp.ne.s32.totalorder %s2903_s14, %s2899_s13 }
   0x9   : > { %p26_p1 = scmp.eq.s32.totalorder %s25_s20, 0  ;;  %p36_p2 = scmp.eq.s32.totalorder %s2907_s15, 0 }
   0xa   : > { %p41_p3 = scmp.ne.s32.totalorder %s2899_s13, %s2895_s12  ;;  %p4572_p4 = scmp.eq.s32.totalorder %s2968_s16, 0 }
   0xb   : > { %s2984_s21 = scalar_select %p26_p1, %s2903_s14, %s28_s19  }
   0xc   : > { %p2986_p5 = por %p36_p2, %p35_p0  ;;  %p2992_p6 = por %p4572_p4, %p41_p3 }
   0xd   : > { %p86_p7 = scmp.eq.s32.totalorder %s2968_s16, 1  ;;  %p92_p8 = scmp.eq.s32.totalorder %s2669_s17, 1 }
   0xe   : > { %s4601_s23 = scalar_select %p2992_p6, 1, 0 }
   0xf   : > { %p2670_p9 = scmp.ge.s32.totalorder %s2907_s15, 1  ;;  %p125_p10 = scmp.lt.s32.totalorder %s2907_s15, 3 }
  0x10   : > { %p2999_p11 = por %p86_p7, %p35_p0  ;;  %p3003_p12 = por %p92_p8, %p41_p3 }
  0x11   : > { %p3007_p13 = pnand %p2670_p9, %p125_p10  ;;  %s2909_s27 = smov [#allocation7]  }
  0x12   : > { %s4602_s24 = scalar_select %p2999_p11, 1, 0 }
  0x13   : > { %s4603_s25 = scalar_select %p3003_p12, 1, 0 }
  0x14   : > { %s4604_s26 = scalar_select %p3007_p13, 1, 0 }
  0x15   : > { %p2707_p2 = pneg %p3007_p13  ;;  %s138_s28 = sshll.u32 %s2909_s27, 4  ;;  %s139_s28 = int_to_ptr.vmem [resolvable:$true] %s138_s28 }
  0x16   : > { %p2720_p4 = scmp.lt.s32.totalorder %s2907_s15, 2  ;;  %p4605_p0 = scmp.eq.s32.totalorder %s2968_s16, 0 }
  0x17   : > { %s149_s30 = sand.u32 1, %s2903_s14   ;;  %s2779_s8 = scalar_lea.hbm %s4569_s1, 128 }
  0x18   : > { %p3017_p7 = pnand %p2707_p2, %p4605_p0  ;;  %p3024_p3 = pnand %p2720_p4, %p2986_p5 }
  0x19   : > { %s2673_s5 = sshll.u32 %s149_s30, 6  ;;  %p2780_p8 = scmp.ne.s32.totalorder %s4569_s1, %s2779_s8 }
  0x1a   : > { %s4607_s4 = scalar_select %p3024_p3, 1, 0 }
  0x1b   : > { %p2781_p9 = pneg %p3017_p7  ;;  %p2786_p4 = scmp.lt.u32.totalorder %s2779_s8, %s4569_s1 }
  0x1d   : > { %p2782_p10 = pnand %p2781_p9, %p2780_p8 }
  0x1f   : > { %p2783_p2 = pneg %p2782_p10 }
  0x21   : > { %p2788_p5 = pnand %p2786_p4, %p2783_p2 }
  0x23   : > { %2791 = shalt.err (!%p2788_p5)
}
  0x24   : > { %s2792_s19 = scalar_lea.vmem %s139_s28, 128  ;;  %p2800_p11 = scmp.lt.s32.totalorder %s139_s28, %s139_s28 }
  0x25   : > { %p2793_p0 = scmp.ne.s32.totalorder %s139_s28, %s2792_s19  ;;  %p2801_p6 = scmp.lt.s32.totalorder %s2792_s19, %s2792_s19 }
  0x27   : > { %p2795_p1 = pnand %p2793_p0, %p2781_p9  ;;  %p2802_p13 = por %p2801_p6, %p2800_p11 }
  0x29   : > { %p2796_p12 = pneg %p2795_p1 }
  0x2b   : > { %p2803_p3 = pnand %p2802_p13, %p2796_p12 }
  0x2d   : > { %2806 = shalt.err (!%p2803_p3)
}
  0x2e   : > { %2710 = dma.hbm_to_vmem [thread:$0]  (!%p3017_p7), %s4569_s1, 128, %s139_s28, [#allocation8]  }
  0x2f   : > { %s2689_s27 = sshll.u32 %s2907_s15, 10  ;;  %s153_s6 = scalar_lea.vmem [#allocation4], %s2673_s5 }
  0x30   : > { %s160_s7 = sshll.u32 %s153_s6, 4  ;;  %s3048_s10 = scalar_lea.hbm %s4568_s0, %s2689_s27  ;;  %s3050_s7 = int_to_ptr.vmem [resolvable:$true] %s160_s7 }
  0x31   : > { %s3052_s29 = scalar_lea.sflag [#allocation5], %s149_s30  ;;  %s2807_s11 = scalar_lea.hbm %s3048_s10, 1024 }
  0x32   : > { %p2808_p6 = scmp.ne.s32.totalorder %s3048_s10, %s2807_s11  ;;  %p4608_p11 = scmp.ne.s32.totalorder %s4607_s4, 0 }
  0x33   : > { %s2812_s17 = scalar_lea.hbm %s4568_s0, 2048  ;;  %p2813_p7 = scmp.lt.u32.totalorder %s3048_s10, %s4568_s0 }
  0x34   : > { %p2809_p12 = pneg %p4608_p11  ;;  %p2814_p3 = scmp.lt.u32.totalorder %s2812_s17, %s2807_s11 }
  0x35   : > { %p2816_p9 = scmp.lt.u32.totalorder %s2807_s11, %s3048_s10 }
  0x36   : > { %p2810_p13 = pnand %p2809_p12, %p2808_p6  ;;  %p2815_p8 = por %p2814_p3, %p2813_p7 }
  0x38   : > { %p2811_p1 = pneg %p2810_p13  ;;  %p2817_p10 = por %p2816_p9, %p2815_p8 }
  0x3a   : > { %p2818_p2 = pnand %p2817_p10, %p2811_p1 }
  0x3c   : > { %2821 = shalt.err (!%p2818_p2)
}
  0x3d   : > { %s2822_s30 = scalar_lea.vmem %s3050_s7, 1024  ;;  %s2910_s22 = smov [#allocation4]  }
  0x3e   : > { %p2823_p4 = scmp.ne.s32.totalorder %s3050_s7, %s2822_s30  ;;  %s2827_s27 = sshll.u32 %s2910_s22, 4  ;;  %s2828_s27 = int_to_ptr.vmem [resolvable:$false] %s2827_s27 }
  0x3f   : > { %s2829_s6 = scalar_lea.vmem %s2828_s27, 2048  ;;  %p2830_p6 = scmp.lt.s32.totalorder %s3050_s7, %s2828_s27 }
  0x40   : > { %p2825_p5 = pnand %p2823_p4, %p2809_p12  ;;  %p2831_p13 = scmp.lt.s32.totalorder %s2829_s6, %s2822_s30 }
  0x42   : > { %p2826_p0 = pneg %p2825_p5  ;;  %p2832_p7 = por %p2831_p13, %p2830_p6 }
  0x44   : > { %p2833_p3 = pnand %p2832_p7, %p2826_p0 }
  0x46   : > { %2836 = shalt.err (!%p2833_p3)
}
  0x47   : > { %s2911_s8 = smov 128   ;;  %s2912_s9 = smov 8  }
  0x48   : > { %2714 = dma.hbm_to_vmem [thread:$0]  (!%p4608_p11), %s3048_s10, 1024, %s3050_s7, %s3052_s29, %s2911_s8, %s2911_s8, %s2912_s9  }
  0x49   : > { %p4609_p12 = scmp.ne.s32.totalorder %s4604_s26, 0 }
  0x4b   : > { %172 = sbr.rel (%p4609_p12) target bundleno = 1054 (0x41e), region = 28 }
  0x52   : > { %s3083_s11 = sand.u32 1, %s2899_s13   ;;  %p4610_p1 = scmp.ne.s32.totalorder %s4601_s23, 0 }
  0x53   : > { %s2677_s28 = sshll.u32 %s3083_s11, 6  ;;  %s175_s5 = scalar_lea.sflag [#allocation5], %s3083_s11 }
  0x54   : > { %s3087_s17 = scalar_lea.vmem [#allocation4], %s2677_s28 }
  0x55   : > { %2882 = dma.done.wait (%p4610_p1), %s175_s5, 1024  }
  0x56   : > { %2884 = vsyncadd (%p4610_p1), %s175_s5, 4294966272  ;;  %p4611_p11 = scmp.eq.s32.totalorder %s2968_s16, 0 }
  0x58   : > { %2886 = dma.done.wait (%p4611_p11), [#allocation8], 128   ;;  %p4612_p8 = pmov %p4611_p11 }
  0x59   : > { %vm230_vm0 = vcmask 139264   ;;  %vm239_vm1 = vcmask 7168   ;;  %v4593_v0 = vmov 0.0   ;;  %vm253_vm2 = vcmask 146568   ;;  %v216_v1 = vld [vmem:[%s3087_s17 + $0x10] sm:$0xff]  ;;  %v214_v2 = vld [vmem:[%s3087_s17] sm:$0xff] }
  0x5a   : > { %2888 = vsyncadd (%p4612_p8), [#allocation8], 4294967168  ;;  %232 = vst.msk [vmem:[#allocation2 + $0x18] sm:$0x1] %vm230_vm0, %v4593_v0  ;;  %vm242_vm3 = vcmask 1024   ;;  %vm256_vm4 = vcmask 140424   ;;  %2523 = vmatprep.mubr.f32.mxu0 %v4593_v0  ;;  %v325_v39 = vlaneseq }
  0x5b   : > { %245 = vst.msk [vmem:[#allocation2 + $0x20] sm:$0xff] %vm239_vm1, %v4593_v0  ;;  %241 = vst.msk [vmem:[#allocation2 + $0x8] sm:$0xff] %vm239_vm1, %v4593_v0  ;;  %v217_v3 = vld [vmem:[%s3087_s17 + $0x18] sm:$0xff]  ;;  %v224_v4 = vmax.f32 %v216_v1, 0.0  ;;  %v222_v5 = vmax.f32 %v214_v2, 0.0  ;;  %v215_v6 = vld [vmem:[%s3087_s17 + $0x8] sm:$0xff] }
  0x5c   : > { %231 = vst.msk [vmem:[#allocation2] sm:$0x1] %vm230_vm0, %v4593_v0  ;;  %233 = vst.msk [vmem:[#allocation2 + $0x30] sm:$0x1] %vm230_vm0, %v4593_v0  ;;  %s2914_s23 = smov 1   ;;  %v225_v7 = vmax.f32 %v217_v3, 0.0 }
  0x5d   : > { %234 = vst.msk [vmem:[#allocation2 + $0x48] sm:$0x1] %vm230_vm0, %v4593_v0  ;;  %235 = vst.msk [vmem:[#allocation2 + $0x11] sm:$0x1] %vm230_vm0, %v4593_v0  ;;  %279 = vrot.lane.b32.xlu1 %v224_v4, %s2914_s23  ;;  %275 = vrot.lane.b32.xlu0 %v222_v5, %s2914_s23  ;;  %v223_v8 = vmax.f32 %v215_v6, 0.0  ;;  %v219_v9 = vld [vmem:[%s3087_s17 + $0x28] sm:$0xff] }
  0x5e   : > { %236 = vst.msk [vmem:[#allocation2 + $0x29] sm:$0x1] %vm230_vm0, %v4593_v0  ;;  %237 = vst.msk [vmem:[#allocation2 + $0x41] sm:$0x1] %vm230_vm0, %v4593_v0  ;;  %v218_v10 = vld [vmem:[%s3087_s17 + $0x20] sm:$0xff]  ;;  %v227_v11 = vmax.f32 %v219_v9, 0.0 }
  0x5f   : > { %238 = vst.msk [vmem:[#allocation2 + $0x59] sm:$0x1] %vm230_vm0, %v4593_v0  ;;  %v226_v12 = vmax.f32 %v218_v10, 0.0  ;;  %v221_v13 = vld [vmem:[%s3087_s17 + $0x38] sm:$0xff]  ;;  %v220_v14 = vld [vmem:[%s3087_s17 + $0x30] sm:$0xff]  ;;  %vm299_vm5 = vcmask 138248  }
  0x60   : > { %248 = vst.msk [vmem:[#allocation2 + $0x38] sm:$0xff] %vm239_vm1, %v4593_v0  ;;  %251 = vst.msk [vmem:[#allocation2 + $0x50] sm:$0xff] %vm239_vm1, %v4593_v0  ;;  %v229_v15 = vmax.f32 %v221_v13, 0.0  ;;  %v228_v16 = vmax.f32 %v220_v14, 0.0  ;;  %s2915_s26 = smov 127   ;;  %vm1017_vm6 = vcmask 1046528  }
  0x61   : > { %244 = vst.msk [vmem:[#allocation2 + $0x18] sm:$0xff] %vm239_vm1, %v4593_v0  ;;  %240 = vst.msk [vmem:[#allocation2] sm:$0xff] %vm239_vm1, %v4593_v0  ;;  %281 = vrot.lane.b32.xlu1 %v225_v7, %s2914_s23  ;;  %277 = vrot.lane.b32.xlu0 %v223_v8, %s2914_s23  ;;  %v2916_v37 = vmov 1983009808   ;;  %v3226_v55 = vshrl.u32 %v325_v39, 7  ;;  %s2917_s4 = smov 126  }
  0x62   : > { %259 = vst.msk [vmem:[#allocation2 + $0x20] sm:$0xff] %vm253_vm2, %v4593_v0  ;;  %255 = vst.msk [vmem:[#allocation2 + $0x8] sm:$0xff] %vm253_vm2, %v4593_v0  ;;  %v323_v38 = vunpack.c.l.s4 %v2916_v37  ;;  %vm1730_vm7 = vcmask 1045504   ;;  %s2919_s7 = smov 32   ;;  %s2920_s10 = smov 16   ;;  %vm512_vm8 = vcmask 130048  }
  0x63   : > { %247 = vst.msk [vmem:[#allocation2 + $0x30] sm:$0xff] %vm239_vm1, %v4593_v0  ;;  %250 = vst.msk [vmem:[#allocation2 + $0x48] sm:$0xff] %vm239_vm1, %v4593_v0  ;;  %s2921_s29 = smov 64   ;;  %s2922_s19 = smov 48   ;;  %vm514_vm9 = vcmask 261120   ;;  %vm516_vm10 = vcmask 392192  }
  0x64   : > { %262 = vst.msk [vmem:[#allocation2 + $0x38] sm:$0xff] %vm253_vm2, %v4593_v0  ;;  %265 = vst.msk [vmem:[#allocation2 + $0x50] sm:$0xff] %vm253_vm2, %v4593_v0  ;;  %v324_v54 = vunpack.c.0.s8 %v323_v38  ;;  %s2923_s20 = smov 96   ;;  %s2924_s30 = smov 80   ;;  %vm518_vm11 = vcmask 523264   ;;  %vm520_vm12 = vcmask 654336  }
  0x65   : > { %246 = vst.msk [vmem:[#allocation2 + $0x28] sm:$0x3] %vm242_vm3, %v4593_v0  ;;  %243 = vst.msk [vmem:[#allocation2 + $0x10] sm:$0x3] %vm242_vm3, %v4593_v0  ;;  %285 = vrot.lane.b32.xlu1 %v227_v11, %s2914_s23  ;;  %283 = vrot.lane.b32.xlu0 %v226_v12, %s2914_s23  ;;  %s2925_s22 = smov 112   ;;  %vm522_vm13 = vcmask 785408  }
  0x66   : > { %249 = vst.msk [vmem:[#allocation2 + $0x40] sm:$0x3] %vm242_vm3, %v4593_v0  ;;  %252 = vst.msk [vmem:[#allocation2 + $0x58] sm:$0x3] %vm242_vm3, %v4593_v0  ;;  %v3251_v62 = vsub.s32 %v324_v54, %v3226_v55  ;;  %vm524_vm14 = vcmask 916480   ;;  %vm2452_vm15 = vcmask 1043456  }
  0x67   : > { %258 = vst.msk [vmem:[#allocation2 + $0x18] sm:$0xff] %vm253_vm2, %v4593_v0  ;;  %254 = vst.msk [vmem:[#allocation2] sm:$0xff] %vm253_vm2, %v4593_v0  ;;  %vm2448_vm0 = vcmask 293888   ;;  %s2679_s27 = sshll.u32 %s3083_s11, 4  ;;  %s2690_s9 = sshll.u32 %s2968_s16, 8 }
  0x68   : > { %260 = vst.msk [vmem:[#allocation2 + $0x28] sm:$0x3] %vm256_vm4, %v4593_v0  ;;  %257 = vst.msk [vmem:[#allocation2 + $0x10] sm:$0x3] %vm256_vm4, %v4593_v0  ;;  %s202_s6 = scalar_lea.vmem [#allocation9], %s2679_s27  ;;  %s2560_s17 = scalar_lea.hbm %s4570_s2, %s2690_s9 }
  0x69   : > { %261 = vst.msk [vmem:[#allocation2 + $0x30] sm:$0xff] %vm253_vm2, %v4593_v0  ;;  %264 = vst.msk [vmem:[#allocation2 + $0x48] sm:$0xff] %vm253_vm2, %v4593_v0  ;;  %289 = vrot.lane.b32.xlu1 %v229_v15, %s2914_s23  ;;  %287 = vrot.lane.b32.xlu0 %v228_v16, %s2914_s23  ;;  %s2562_s8 = sshll.u32 %s202_s6, 4  ;;  %s2544_s23 = scalar_lea.sflag [#allocation6], %s3083_s11  ;;  %s4521_s8 = int_to_ptr.vmem [resolvable:$true] %s2562_s8 }
  0x6a   : > { %263 = vst.msk [vmem:[#allocation2 + $0x40] sm:$0x3] %vm256_vm4, %v4593_v0  ;;  %266 = vst.msk [vmem:[#allocation2 + $0x58] sm:$0x3] %vm256_vm4, %v4593_v0  ;;  %p4663_p10 = scmp.ne.s32.totalorder %s4602_s24, 0 }
  0xcf   : > { %v280_v17 = vpop.permute.xlu1 %279  ;;  %v276_v18 = vpop.permute.xlu0 %275 }
  0xd0   : > { %302 = vst.msk [vmem:[#allocation2 + $0x19] sm:$0xff] %vm299_vm5, %v280_v17  ;;  %300 = vst.msk [vmem:[#allocation2 + $0x1] sm:$0xff] %vm299_vm5, %v276_v18 }
  0xd3   : > { %v282_v19 = vpop.permute.xlu1 %281  ;;  %v278_v20 = vpop.permute.xlu0 %277 }
  0xd4   : > { %303 = vst.msk [vmem:[#allocation2 + $0x21] sm:$0xff] %vm299_vm5, %v282_v19  ;;  %301 = vst.msk [vmem:[#allocation2 + $0x9] sm:$0xff] %vm299_vm5, %v278_v20 }
  0xd7   : > { %v286_v21 = vpop.permute.xlu1 %285  ;;  %v284_v22 = vpop.permute.xlu0 %283  ;;  %v3188_v34 = vld [vmem:[#allocation2] sm:$0xff]  ;;  %v3238_v58 = vld [vmem:[#allocation2 + $0x18] sm:$0xff] }
  0xd8   : > { %305 = vst.msk [vmem:[#allocation2 + $0x39] sm:$0xff] %vm299_vm5, %v286_v21  ;;  %304 = vst.msk [vmem:[#allocation2 + $0x31] sm:$0xff] %vm299_vm5, %v284_v22  ;;  %v1731_v37 = vrot.slane %v3188_v34, 2 }
  0xdb   : > { %v290_v23 = vpop.permute.xlu1 %289  ;;  %v288_v24 = vpop.permute.xlu0 %287  ;;  %v3164_v25 = vld [vmem:[#allocation2 + $0x20] sm:$0xff]  ;;  %v3166_v26 = vld [vmem:[#allocation2 + $0x8] sm:$0xff]  ;;  %v3168_v27 = vld [vmem:[#allocation2 + $0x10] sm:$0x3] }
  0xdc   : > { %307 = vst.msk [vmem:[#allocation2 + $0x51] sm:$0xff] %vm299_vm5, %v290_v23  ;;  %306 = vst.msk [vmem:[#allocation2 + $0x49] sm:$0xff] %vm299_vm5, %v288_v24  ;;  %549 = vrot.lane.b32.xlu1 %v3164_v25, %s2915_s26  ;;  %545 = vrot.lane.b32.xlu0 %v3166_v26, %s2915_s26  ;;  %v1019_v28 = vrot.slane %v3166_v26, 1  ;;  %v1021_v29 = vrot.slane %v3168_v27, 1  ;;  %v3178_v30 = vld [vmem:[#allocation2 + $0x28] sm:$0x3] }
  0xdd   : > { %v1024_v40 = vrot.slane %v3164_v25, 1  ;;  %v1026_v41 = vrot.slane %v3178_v30, 1  ;;  %v1737_v18 = vrot.slane %v3164_v25, 2  ;;  %v1732_v22 = vrot.slane %v3166_v26, 2 }
  0xde   : > { %v3201_v44 = vsel %vm1017_vm6, %v1019_v28, %v1021_v29  ;;  %v1736_v23 = vrot.slane %v3238_v58, 2 }
  0xdf   : > { %v3180_v31 = vld [vmem:[#allocation2 + $0x38] sm:$0xff]  ;;  %v3182_v32 = vld [vmem:[#allocation2 + $0x30] sm:$0xff]  ;;  %v3184_v33 = vld [vmem:[#allocation2 + $0x40] sm:$0x3]  ;;  %v3231_v56 = vsel %vm1017_vm6, %v1024_v40, %v1026_v41 }
  0xe0   : > { %553 = vrot.lane.b32.xlu0 %v3180_v31, %s2915_s26  ;;  %v1029_v35 = vrot.slane %v3180_v31, 1  ;;  %v1031_v36 = vrot.slane %v3184_v33, 1  ;;  %v320_v42 = vcombine.low %v3188_v34, %v3182_v32  ;;  %v388_v43 = vcombine.low %v3166_v26, %v3180_v31 }
  0xe1   : > { %v389_v46 = vcombine.high %v3166_v26, %v3180_v31  ;;  %v321_v47 = vcombine.high %v3188_v34, %v3182_v32  ;;  %v1742_v17 = vrot.slane %v3180_v31, 2  ;;  %v1741_v19 = vrot.slane %v3182_v32, 2 }
  0xe2   : > { %v3206_v45 = vsel %vm1017_vm6, %v1029_v35, %v1031_v36  ;;  %v3262_v2 = vrot.slane %v320_v42, %v3251_v62  ;;  %v3269_v5 = vrot.slane %v388_v43, %v3251_v62  ;;  %v3330_v39 = vsel %vm1730_vm7, %v1736_v23, %v1737_v18 }
  0xe3   : > { %v3212_v48 = vld [vmem:[#allocation2 + $0x50] sm:$0xff]  ;;  %v1114_v49 = vcombine.low %v3201_v44, %v3206_v45  ;;  %v1115_v50 = vcombine.high %v3201_v44, %v3206_v45  ;;  %v3218_v51 = vld [vmem:[#allocation2 + $0x58] sm:$0x3]  ;;  %v3240_v59 = vld [vmem:[#allocation2 + $0x48] sm:$0xff]  ;;  %v3296_v15 = vrot.slane %v389_v46, %v3251_v62  ;;  %v3327_v38 = vsel %vm1730_vm7, %v1741_v19, %v1742_v17  ;;  %4615 = vst [vmem:[#allocation15_spill] sm:$0xff] %v3330_v39 }
  0xe4   : > { %543 = vrot.lane.b32.xlu0 %v3188_v34, %s2915_s26  ;;  %557 = vrot.lane.b32.xlu1 %v3212_v48, %s2915_s26  ;;  %v1034_v52 = vrot.slane %v3212_v48, 1  ;;  %v1036_v53 = vrot.slane %v3218_v51, 1  ;;  %v336_v63 = vcombine.low %v3238_v58, %v3240_v59  ;;  %v404_v1 = vcombine.low %v3164_v25, %v3212_v48  ;;  %4614 = vst [vmem:[#allocation14_spill] sm:$0xff] %v3327_v38 }
  0xe5   : > { %v1747_v4 = vrot.slane %v3212_v48, 2  ;;  %v1746_v7 = vrot.slane %v3240_v59, 2  ;;  %v405_v9 = vcombine.high %v3164_v25, %v3212_v48  ;;  %v3286_v13 = vrot.slane %v1114_v49, %v3251_v62 }
  0xe6   : > { %v3236_v57 = vsel %vm1017_vm6, %v1034_v52, %v1036_v53  ;;  %v3265_v3 = vrot.slane %v336_v63, %v3251_v62  ;;  %v3272_v6 = vrot.slane %v404_v1, %v3251_v62  ;;  %v3320_v29 = vrot.slane %v1115_v50, %v3251_v62 }
  0xe7   : > { %v1130_v60 = vcombine.low %v3231_v56, %v3236_v57  ;;  %v1131_v61 = vcombine.high %v3231_v56, %v3236_v57  ;;  %v3299_v16 = vrot.slane %v405_v9, %v3251_v62  ;;  %v3313_v24 = vsel %vm1730_vm7, %v1746_v7, %v1747_v4 }
  0xe8   : > { %551 = vrot.lane.b32.xlu0 %v3182_v32, %s2915_s26  ;;  %547 = vrot.lane.b32.xlu1 %v3238_v58, %s2915_s26  ;;  %v353_v8 = vcombine.high %v3262_v2, %v3265_v3  ;;  %v352_v10 = vcombine.low %v3262_v2, %v3265_v3  ;;  %v421_v11 = vcombine.high %v3269_v5, %v3272_v6  ;;  %v1734_v19 = vrot.slane %v3168_v27, 2 }
  0xe9   : > { %v420_v12 = vcombine.low %v3269_v5, %v3272_v6  ;;  %v3289_v14 = vrot.slane %v1130_v60, %v3251_v62  ;;  %v436_v21 = vcombine.low %v3296_v15, %v3299_v16  ;;  %4613 = vst [vmem:[#allocation13_spill] sm:$0xff] %v3313_v24  ;;  %v3323_v36 = vrot.slane %v1131_v61, %v3251_v62 }
  0xea   : > { %v1775_v42 = vcombine.low %v3330_v39, %v3313_v24  ;;  %v3341_v49 = vsel %vm1730_vm7, %v1731_v37, %v1732_v22  ;;  %v337_v53 = vcombine.high %v3238_v58, %v3240_v59  ;;  %v3358_v60 = vrot.slane %v321_v47, %v3251_v62 }
  0xeb   : > { %v1147_v20 = vcombine.high %v3286_v13, %v3289_v14  ;;  %v1146_v41 = vcombine.low %v3286_v13, %v3289_v14  ;;  %v1162_v43 = vcombine.low %v3320_v29, %v3323_v36  ;;  %v1163_v46 = vcombine.high %v3320_v29, %v3323_v36  ;;  %4616 = vst [vmem:[#allocation16_spill] sm:$0xff] %v3341_v49 }
  0xec   : > { %783 = vrot.lane.b32.xlu0 %v3166_v26, %s2917_s4  ;;  %555 = vrot.lane.b32.xlu1 %v3240_v59, %s2915_s26  ;;  %v1759_v50 = vcombine.low %v3341_v49, %v3327_v38  ;;  %v3352_v54 = vrot.slane %v1775_v42, %v3251_v62  ;;  %v3361_v61 = vrot.slane %v337_v53, %v3251_v62  ;;  %v1744_v37 = vrot.slane %v3184_v33, 2 }
  0xed   : > { %v437_v63 = vcombine.high %v3296_v15, %v3299_v16  ;;  %v3384_v23 = vsel %vm1730_vm7, %v1732_v22, %v1734_v19  ;;  %v1739_v42 = vrot.slane %v3178_v30, 2  ;;  %v1749_v53 = vrot.slane %v3218_v51, 2 }
  0xee   : > { %v3370_v1 = vrot.slane %v1759_v50, %v3251_v62  ;;  %v368_v7 = vcombine.low %v3358_v60, %v3361_v61  ;;  %v369_v47 = vcombine.high %v3358_v60, %v3361_v61  ;;  %v3393_v27 = vsel %vm1730_vm7, %v1742_v17, %v1744_v37 }
  0xef   : > { %v3396_v50 = vsel %vm1730_vm7, %v1737_v18, %v1739_v42  ;;  %v1018_v30 = vrot.slane %v3188_v34, 1  ;;  %v3412_v17 = vsel %vm1730_vm7, %v1747_v4, %v1749_v53  ;;  %v1028_v51 = vrot.slane %v3182_v32, 1 }
  0xf0   : > { %791 = vrot.lane.b32.xlu0 %v3180_v31, %s2917_s4  ;;  %787 = vrot.lane.b32.xlu1 %v3164_v25, %s2917_s4  ;;  %v1033_v4 = vrot.slane %v3240_v59, 1  ;;  %v2918_v25 = vmov 1934713408   ;;  %v1843_v13 = vcombine.low %v3396_v50, %v3412_v17 }
  0xf1   : > { %v3407_v33 = vsel %vm1017_vm6, %v1018_v30, %v1019_v28  ;;  %v1030_v26 = vsel %vm1017_vm6, %v1028_v51, %v1029_v35  ;;  %v355_v31 = vunpack.c.l.s4 %v2918_v25  ;;  %v1827_v25 = vcombine.low %v3384_v23, %v3393_v27 }
  0xf2   : > { %v1047_v3 = vcombine.high %v3407_v33, %v1030_v26 }
  0xf3   : > { %v356_v35 = vunpack.c.0.s8 %v355_v31  ;;  %v1851_v31 = vrot.slane %v1843_v13, %v3251_v62 }
  0xf4   : > { %781 = vrot.lane.b32.xlu0 %v3188_v34, %s2917_s4  ;;  %795 = vrot.lane.b32.xlu1 %v3212_v48, %s2917_s4  ;;  %v1023_v34 = vrot.slane %v3238_v58, 1  ;;  %v1061_v18 = vrot.slane %v1047_v3, %v3251_v62 }
  0xf6   : > { %v1025_v28 = vsel %vm1017_vm6, %v1023_v34, %v1024_v40  ;;  %v3465_v40 = vsub.s32 %v356_v35, %v3226_v55 }
  0xf8   : > { %789 = vrot.lane.b32.xlu0 %v3182_v32, %s2917_s4  ;;  %785 = vrot.lane.b32.xlu1 %v3238_v58, %s2917_s4  ;;  %v1035_v32 = vsel %vm1017_vm6, %v1033_v4, %v1034_v52  ;;  %v435_v52 = vrot.slane %v421_v11, %v3465_v40  ;;  %v1170_v53 = vrot.slane %v1162_v43, %v3465_v40 }
  0xf9   : > { %v1062_v48 = vcombine.low %v1025_v28, %v1035_v32  ;;  %v1063_v58 = vcombine.high %v1025_v28, %v1035_v32  ;;  %v1177_v34 = vrot.slane %v1163_v46, %v3465_v40 }
  0xfb   : > { %v1070_v2 = vrot.slane %v1062_v48, %v3251_v62  ;;  %v1180_v48 = vcombine.high %v1170_v53, %v4593_v0 }
  0xfc   : > { %1494 = vrot.lane.b32.xlu0 %v3201_v44, %s2917_s4  ;;  %793 = vrot.lane.b32.xlu1 %v3240_v59, %s2917_s4  ;;  %v444_v59 = vrot.slane %v436_v21, %v3465_v40  ;;  %v1161_v21 = vrot.slane %v1147_v20, %v3465_v40 }
  0xfe   : > { %v1179_v46 = vcombine.high %v1161_v21, %v4593_v0 }
 0x100   : > { %1502 = vrot.lane.b32.xlu0 %v3206_v45, %s2917_s4  ;;  %1498 = vrot.lane.b32.xlu1 %v3231_v56, %s2917_s4 }
 0x104   : > { %1969 = vrot.lane.b32.xlu0 %v3384_v23, %s2915_s26  ;;  %1506 = vrot.lane.b32.xlu1 %v3236_v57, %s2917_s4 }
 0x108   : > { %1977 = vrot.lane.b32.xlu0 %v3393_v27, %s2915_s26  ;;  %1973 = vrot.lane.b32.xlu1 %v3396_v50, %s2915_s26 }
 0x10c   : > { %1492 = vrot.lane.b32.xlu0 %v3407_v33, %s2917_s4  ;;  %1981 = vrot.lane.b32.xlu1 %v3412_v17, %s2915_s26 }
 0x110   : > { %1500 = vrot.lane.b32.xlu0 %v1030_v26, %s2917_s4  ;;  %1496 = vrot.lane.b32.xlu1 %v1025_v28, %s2917_s4 }
 0x114   : > { %1967 = vrot.lane.b32.xlu0 %v3341_v49, %s2915_s26  ;;  %1504 = vrot.lane.b32.xlu1 %v1035_v32, %s2917_s4 }
 0x118   : > { %1975 = vrot.lane.b32.xlu0 %v3327_v38, %s2915_s26  ;;  %1971 = vrot.lane.b32.xlu1 %v3330_v39, %s2915_s26 }
 0x11c   : > { %1262 = vrot.lane.b32.xlu0 %v3201_v44, %s2915_s26  ;;  %1979 = vrot.lane.b32.xlu1 %v3313_v24, %s2915_s26  ;;  %v367_v44 = vrot.slane %v353_v8, %v3465_v40  ;;  %v453_v8 = vcombine.high %v435_v52, %v4593_v0 }
 0x120   : > { %1270 = vrot.lane.b32.xlu0 %v3206_v45, %s2915_s26  ;;  %1266 = vrot.lane.b32.xlu1 %v3231_v56, %s2915_s26  ;;  %v3479_v45 = vrot.slane %v420_v12, %v3465_v40  ;;  %v3494_v56 = vrot.slane %v352_v10, %v3465_v40  ;;  %v385_v10 = vcombine.high %v367_v44, %v4593_v0 }
 0x121   : > { %v1077_v12 = vrot.slane %v1063_v58, %v3251_v62 }
 0x122   : > { %v452_v55 = vcombine.high %v3479_v45, %v4593_v0  ;;  %4617 = vst [vmem:[#allocation17_spill] sm:$0xff] %v3494_v56  ;;  %v384_v5 = vcombine.high %v3494_v56, %v4593_v0 }
 0x123   : > { %v1094_v19 = vcombine.low %v1061_v18, %v1077_v12 }
 0x124   : > { %1260 = vrot.lane.b32.xlu0 %v3407_v33, %s2915_s26  ;;  %1274 = vrot.lane.b32.xlu1 %v3236_v57, %s2915_s26  ;;  %v1046_v57 = vcombine.low %v3407_v33, %v1030_v26 }
 0x125   : > { %v1102_v30 = vrot.slane %v1094_v19, %v3465_v40 }
 0x126   : > { %v1054_v6 = vrot.slane %v1046_v57, %v3251_v62  ;;  %v1835_v57 = vrot.slane %v1827_v25, %v3251_v62 }
 0x128   : > { %1268 = vrot.lane.b32.xlu0 %v1030_v26, %s2915_s26  ;;  %1264 = vrot.lane.b32.xlu1 %v1025_v28, %s2915_s26  ;;  %v1079_v11 = vcombine.high %v1054_v6, %v1070_v2  ;;  %v1078_v37 = vcombine.low %v1054_v6, %v1070_v2  ;;  %v3549_v26 = vrot.slane %v1146_v41, %v3465_v40 }
 0x129   : > { %v454_v2 = vcombine.high %v444_v59, %v4593_v0  ;;  %v1859_v6 = vcombine.low %v1835_v57, %v1851_v31  ;;  %v1860_v16 = vcombine.high %v1835_v57, %v1851_v31 }
 0x12a   : > { %v1093_v22 = vrot.slane %v1079_v11, %v3465_v40  ;;  %v3531_v33 = vrot.slane %v1078_v37, %v3465_v40  ;;  %v1178_v29 = vcombine.high %v3549_v26, %v4593_v0 }
 0x12b   : > { %v3661_v57 = vrot.slane %v1860_v16, %v3465_v40 }
 0x12c   : > { %2207 = vrot.lane.b32.xlu0 %v3384_v23, %s2917_s4  ;;  %1272 = vrot.lane.b32.xlu1 %v1035_v32, %s2915_s26  ;;  %v1110_v43 = vcombine.high %v3531_v33, %v4593_v0  ;;  %v1111_v36 = vcombine.high %v1093_v22, %v4593_v0  ;;  %v1112_v32 = vcombine.high %v1102_v30, %v4593_v0  ;;  %s2837_s26 = scalar_lea.vmem %s4521_s8, 256 }
 0x12d   : > { %p2838_p9 = scmp.ne.s32.totalorder %s4521_s8, %s2837_s26 }
 0x12f   : > { %p2839_p2 = pnand %p2838_p9, %p4663_p10 }
 0x130   : > { %2215 = vrot.lane.b32.xlu0 %v3393_v27, %s2917_s4  ;;  %2211 = vrot.lane.b32.xlu1 %v3396_v50, %s2917_s4 }
 0x131   : > { %p2840_p4 = pneg %p2839_p2 }
 0x134   : > { %2205 = vrot.lane.b32.xlu0 %v3341_v49, %s2917_s4  ;;  %2219 = vrot.lane.b32.xlu1 %v3412_v17, %s2917_s4 }
 0x138   : > { %2213 = vrot.lane.b32.xlu0 %v3327_v38, %s2917_s4  ;;  %2209 = vrot.lane.b32.xlu1 %v3330_v39, %s2917_s4 }
 0x13c   : > { %2217 = vrot.lane.b32.xlu1 %v3313_v24, %s2917_s4  ;;  %461 = vrot.lane.b32.xlu0 %v367_v44, %s2919_s7  ;;  %s2926_s4 = smov [#allocation9]  }
 0x140   : > { %489 = vrot.lane.b32.xlu1 %v435_v52, %s2919_s7  ;;  %485 = vrot.lane.b32.xlu0 %v452_v55, %s2920_s10  ;;  %v376_v52 = vrot.slane %v368_v7, %v3465_v40  ;;  %v1095_v55 = vcombine.high %v1061_v18, %v1077_v12  ;;  %v1181_v7 = vcombine.high %v1177_v34, %v4593_v0 }
 0x141   : > { %v3604_v18 = vrot.slane %v1859_v6, %v3465_v40 }
 0x142   : > { %v1109_v3 = vrot.slane %v1095_v55, %v3465_v40 }
 0x143   : > { %4618 = vst [vmem:[#allocation18_spill] sm:$0xff] %v3604_v18 }
 0x144   : > { %497 = vrot.lane.b32.xlu1 %v444_v59, %s2921_s29  ;;  %457 = vrot.lane.b32.xlu0 %v384_v5, %s2920_s10  ;;  %v386_v59 = vcombine.high %v376_v52, %v4593_v0 }
 0x148   : > { %493 = vrot.lane.b32.xlu1 %v453_v8, %s2922_s19  ;;  %465 = vrot.lane.b32.xlu0 %v385_v10, %s2922_s19  ;;  %v1791_v8 = vcombine.low %v3370_v1, %v3352_v54 }
 0x14c   : > { %1215 = vrot.lane.b32.xlu1 %v1161_v21, %s2919_s7  ;;  %1187 = vrot.lane.b32.xlu0 %v1093_v22, %s2919_s7  ;;  %v3607_v21 = vrot.slane %v1791_v8, %v3465_v40 }
 0x14e   : > { %v3523_v42 = vpop.permute.xlu0 %545  ;;  %v3535_v20 = vpop.permute.xlu1 %549  ;;  %4619 = vst [vmem:[#allocation19_spill] sm:$0xff] %v3607_v21 }
 0x150   : > { %1223 = vrot.lane.b32.xlu1 %v1170_v53, %s2921_s29  ;;  %1195 = vrot.lane.b32.xlu0 %v1102_v30, %s2921_s29  ;;  %v1891_v30 = vcombine.high %v3604_v18, %v4593_v0 }
 0x152   : > { %v3537_v51 = vpop.permute.xlu0 %553 }
 0x153   : > { %v635_v6 = vcombine.low %v3523_v42, %v3537_v51  ;;  %v636_v16 = vcombine.high %v3523_v42, %v3537_v51 }
 0x154   : > { %1231 = vrot.lane.b32.xlu1 %v1177_v34, %s2923_s20  ;;  %1183 = vrot.lane.b32.xlu0 %v1110_v43, %s2920_s10  ;;  %v1823_v34 = vcombine.high %v3607_v21, %v4593_v0 }
 0x156   : > { %v3553_v28 = vpop.permute.xlu1 %557  ;;  %v3555_v4 = vpop.permute.xlu0 %543 }
 0x158   : > { %1211 = vrot.lane.b32.xlu1 %v1178_v29, %s2920_s10  ;;  %1191 = vrot.lane.b32.xlu0 %v1111_v36, %s2922_s19 }
 0x15a   : > { %v3564_v14 = vpop.permute.xlu1 %547  ;;  %v3566_v41 = vpop.permute.xlu0 %551 }
 0x15b   : > { %v568_v22 = vcombine.high %v3555_v4, %v3566_v41 }
 0x15c   : > { %1219 = vrot.lane.b32.xlu1 %v1179_v46, %s2922_s19  ;;  %1199 = vrot.lane.b32.xlu0 %v1112_v32, %s2924_s30  ;;  %v451_v46 = vrot.slane %v437_v63, %v3465_v40  ;;  %v3631_v32 = vrot.slane %v369_v47, %v3465_v40  ;;  %v1113_v47 = vcombine.high %v1109_v3, %v4593_v0 }
 0x15d   : > { %v582_v43 = vrot.slane %v568_v22, %v3251_v62 }
 0x15e   : > { %v3575_v35 = vpop.permute.xlu1 %555  ;;  %v3577_v44 = vpop.permute.xlu0 %783 }
 0x15f   : > { %v584_v10 = vcombine.high %v3564_v14, %v3575_v35 }
 0x160   : > { %1227 = vrot.lane.b32.xlu1 %v1180_v48, %s2924_s30  ;;  %469 = vrot.lane.b32.xlu0 %v376_v52, %s2921_s29  ;;  %v651_v52 = vcombine.low %v3535_v20, %v3553_v28 }
 0x161   : > { %v598_v19 = vrot.slane %v584_v10, %v3251_v62  ;;  %v583_v10 = vcombine.low %v3564_v14, %v3575_v35  ;;  %v652_v35 = vcombine.high %v3535_v20, %v3553_v28 }
 0x162   : > { %v3587_v58 = vpop.permute.xlu1 %787  ;;  %v3589_v5 = vpop.permute.xlu0 %791  ;;  %v659_v31 = vrot.slane %v651_v52, %v3251_v62 }
 0x163   : > { %v615_v25 = vcombine.low %v582_v43, %v598_v19 }
 0x164   : > { %501 = vrot.lane.b32.xlu1 %v454_v2, %s2924_s30  ;;  %1203 = vrot.lane.b32.xlu0 %v1109_v3, %s2923_s20 }
 0x165   : > { %v3650_v2 = vrot.slane %v615_v25, %v3465_v40 }
 0x166   : > { %v3600_v11 = vpop.permute.xlu1 %795  ;;  %v782_v12 = vpop.permute.xlu0 %781 }
 0x168   : > { %1235 = vrot.lane.b32.xlu1 %v1181_v7, %s2925_s22  ;;  %473 = vrot.lane.b32.xlu0 %v386_v59, %s2924_s30  ;;  %v890_v59 = vcombine.high %v3587_v58, %v3600_v11 }
 0x16a   : > { %v786_v37 = vpop.permute.xlu1 %785  ;;  %v790_v53 = vpop.permute.xlu0 %789 }
 0x16b   : > { %v805_v29 = vcombine.low %v782_v12, %v790_v53  ;;  %v806_v7 = vcombine.high %v782_v12, %v790_v53  ;;  %v616_v53 = vcombine.high %v582_v43, %v598_v19  ;;  %v455_v19 = vcombine.high %v451_v46, %v4593_v0 }
 0x16c   : > { %1924 = vrot.lane.b32.xlu1 %v1891_v30, %s2920_s10  ;;  %1896 = vrot.lane.b32.xlu0 %v1823_v34, %s2920_s10  ;;  %v643_v30 = vrot.slane %v635_v6, %v3251_v62  ;;  %v567_v34 = vcombine.low %v3555_v4, %v3566_v41  ;;  %v3690_v4 = vrot.slane %v890_v59, %v3251_v62 }
 0x16d   : > { %v3639_v55 = vrot.slane %v805_v29, %v3251_v62  ;;  %v874_v29 = vcombine.high %v3577_v44, %v3589_v5  ;;  %v820_v14 = vrot.slane %v806_v7, %v3251_v62  ;;  %v873_v59 = vcombine.low %v3577_v44, %v3589_v5 }
 0x16e   : > { %v794_v36 = vpop.permute.xlu1 %793  ;;  %v3621_v13 = vpop.permute.xlu0 %1494  ;;  %v668_v43 = vcombine.high %v643_v30, %v659_v31  ;;  %v575_v20 = vrot.slane %v567_v34, %v3251_v62 }
 0x16f   : > { %v821_v48 = vcombine.low %v786_v37, %v794_v36  ;;  %v822_v60 = vcombine.high %v786_v37, %v794_v36  ;;  %v591_v36 = vrot.slane %v583_v10, %v3251_v62  ;;  %v888_v28 = vrot.slane %v874_v29, %v3251_v62 }
 0x170   : > { %505 = vrot.lane.b32.xlu1 %v451_v46, %s2923_s20  ;;  %477 = vrot.lane.b32.xlu0 %v3631_v32, %s2923_s20  ;;  %v666_v46 = vrot.slane %v652_v35, %v3251_v62  ;;  %v650_v10 = vrot.slane %v636_v16, %v3251_v62  ;;  %v881_v44 = vrot.slane %v873_v59, %v3251_v62 }
 0x171   : > { %v3642_v15 = vrot.slane %v821_v48, %v3251_v62  ;;  %v836_v12 = vrot.slane %v822_v60, %v3251_v62  ;;  %v3697_v48 = vrot.slane %v616_v53, %v3465_v40  ;;  %v682_v60 = vrot.slane %v668_v43, %v3465_v40 }
 0x172   : > { %v3644_v61 = vpop.permute.xlu1 %1498  ;;  %v3646_v63 = vpop.permute.xlu0 %1502  ;;  %v600_v51 = vcombine.high %v575_v20, %v591_v36  ;;  %v922_v7 = vcombine.high %v888_v28, %v3690_v4 }
 0x173   : > { %v838_v8 = vcombine.high %v3639_v55, %v3642_v15  ;;  %v853_v52 = vcombine.low %v820_v14, %v836_v12  ;;  %v854_v43 = vcombine.high %v820_v14, %v836_v12 }
 0x174   : > { %1207 = vrot.lane.b32.xlu1 %v1113_v47, %s2925_s22  ;;  %716 = vrot.lane.b32.xlu0 %v3650_v2, %s2921_s29  ;;  %v889_v47 = vcombine.low %v3587_v58, %v3600_v11  ;;  %v667_v58 = vcombine.low %v643_v30, %v659_v31  ;;  %v683_v11 = vcombine.low %v650_v10, %v666_v46 }
 0x175   : > { %v3664_v3 = vrot.slane %v838_v8, %v3465_v40  ;;  %v3715_v42 = vrot.slane %v853_v52, %v3465_v40  ;;  %v614_v35 = vrot.slane %v600_v51, %v3465_v40  ;;  %v599_v31 = vcombine.low %v575_v20, %v591_v36 }
 0x176   : > { %v3671_v22 = vpop.permute.xlu1 %1506  ;;  %v3673_v37 = vpop.permute.xlu0 %1969  ;;  %v897_v53 = vrot.slane %v889_v47, %v3251_v62  ;;  %v3738_v5 = vrot.slane %v667_v58, %v3465_v40  ;;  %v691_v16 = vrot.slane %v683_v11, %v3465_v40  ;;  %v3746_v47 = vrot.slane %v854_v43, %v3465_v40 }
 0x177   : > { %v3759_v59 = vrot.slane %v599_v31, %v3465_v40  ;;  %v921_v11 = vcombine.low %v888_v28, %v3690_v4 }
 0x178   : > { %1928 = vrot.lane.b32.xlu1 %v3661_v57, %s2919_s7  ;;  %946 = vrot.lane.b32.xlu0 %v3664_v3, %s2919_s7  ;;  %4620 = vst [vmem:[#allocation20_spill] sm:$0xff] %v3738_v5  ;;  %v906_v12 = vcombine.high %v881_v44, %v897_v53  ;;  %v699_v20 = vcombine.high %v3738_v5, %v4593_v0 }
 0x179   : > { %4621 = vst [vmem:[#allocation21_spill] sm:$0xff] %v3759_v59  ;;  %v905_v58 = vcombine.low %v881_v44, %v897_v53  ;;  %v631_v21 = vcombine.high %v3759_v59, %v4593_v0  ;;  %v929_v28 = vrot.slane %v921_v11, %v3465_v40  ;;  %v633_v11 = vcombine.high %v3650_v2, %v4593_v0 }
 0x17a   : > { %v3692_v41 = vpop.permute.xlu1 %1973  ;;  %v3694_v25 = vpop.permute.xlu0 %1977  ;;  %v920_v36 = vrot.slane %v906_v12, %v3465_v40  ;;  %v1600_v2 = vcombine.low %v3644_v61, %v3671_v22 }
 0x17b   : > { %v3782_v44 = vrot.slane %v905_v58, %v3465_v40 }
 0x17c   : > { %509 = vrot.lane.b32.xlu1 %v455_v19, %s2925_s22  ;;  %724 = vrot.lane.b32.xlu0 %v3697_v48, %s2923_s20  ;;  %v3731_v19 = vrot.slane %v922_v7, %v3465_v40  ;;  %v684_v7 = vcombine.high %v650_v10, %v666_v46  ;;  %v837_v46 = vcombine.low %v3639_v55, %v3642_v15 }
 0x17d   : > { %v700_v10 = vcombine.high %v682_v60, %v4593_v0  ;;  %4622 = vst [vmem:[#allocation22_spill] sm:$0xff] %v3782_v44  ;;  %v937_v15 = vcombine.high %v3782_v44, %v4593_v0 }
 0x17e   : > { %v3710_v6 = vpop.permute.xlu1 %1981  ;;  %v3712_v8 = vpop.permute.xlu0 %1492  ;;  %v698_v12 = vrot.slane %v684_v7, %v3465_v40 }
 0x180   : > { %736 = vrot.lane.b32.xlu1 %v682_v60, %s2919_s7  ;;  %954 = vrot.lane.b32.xlu0 %v3715_v42, %s2921_s29  ;;  %v3794_v60 = vrot.slane %v837_v46, %v3465_v40  ;;  %v938_v46 = vcombine.high %v920_v36, %v4593_v0 }
 0x182   : > { %v3725_v34 = vpop.permute.xlu1 %1496  ;;  %v3727_v29 = vpop.permute.xlu0 %1500  ;;  %4623 = vst [vmem:[#allocation23_spill] sm:$0xff] %v3794_v60 }
 0x184   : > { %708 = vrot.lane.b32.xlu1 %v614_v35, %s2919_s7  ;;  %990 = vrot.lane.b32.xlu0 %v3731_v19, %s2923_s20 }
 0x186   : > { %v3740_v30 = vpop.permute.xlu1 %1504  ;;  %v3742_v52 = vpop.permute.xlu0 %1967 }
 0x187   : > { %v1532_v59 = vcombine.low %v3725_v34, %v3740_v30 }
 0x188   : > { %744 = vrot.lane.b32.xlu1 %v691_v16, %s2921_s29  ;;  %962 = vrot.lane.b32.xlu0 %v3746_v47, %s2923_s20 }
 0x18a   : > { %v3751_v14 = vpop.permute.xlu1 %1971  ;;  %v3753_v51 = vpop.permute.xlu0 %1975 }
 0x18c   : > { %974 = vrot.lane.b32.xlu1 %v920_v36, %s2919_s7  ;;  %732 = vrot.lane.b32.xlu0 %v699_v20, %s2920_s10  ;;  %v701_v20 = vcombine.high %v691_v16, %v4593_v0  ;;  %v870_v36 = vcombine.high %v3664_v3, %v4593_v0  ;;  %v634_v3 = vcombine.high %v3697_v48, %v4593_v0 }
 0x18d   : > { %v1516_v48 = vcombine.low %v3712_v8, %v3727_v29 }
 0x18e   : > { %v3764_v43 = vpop.permute.xlu1 %1979  ;;  %v3766_v9 = vpop.permute.xlu0 %1262 }
 0x190   : > { %752 = vrot.lane.b32.xlu1 %v698_v12, %s2923_s20  ;;  %704 = vrot.lane.b32.xlu0 %v631_v21, %s2920_s10  ;;  %v632_v21 = vcombine.high %v614_v35, %v4593_v0  ;;  %v869_v35 = vcombine.high %v3794_v60, %v4593_v0  ;;  %v1608_v60 = vrot.slane %v1600_v2, %v3251_v62 }
 0x191   : > { %v871_v2 = vcombine.high %v3715_v42, %v4593_v0 }
 0x192   : > { %v3776_v53 = vpop.permute.xlu1 %1266  ;;  %v3778_v4 = vpop.permute.xlu0 %1270 }
 0x194   : > { %982 = vrot.lane.b32.xlu1 %v929_v28, %s2921_s29  ;;  %740 = vrot.lane.b32.xlu0 %v700_v10, %s2922_s19  ;;  %v2007_v10 = vcombine.low %v3751_v14, %v3764_v43 }
 0x196   : > { %v3787_v31 = vpop.permute.xlu1 %1274  ;;  %v3789_v55 = vpop.permute.xlu0 %1260 }
 0x198   : > { %970 = vrot.lane.b32.xlu1 %v937_v15, %s2920_s10  ;;  %712 = vrot.lane.b32.xlu0 %v632_v21, %s2922_s19  ;;  %v1991_v15 = vcombine.low %v3742_v52, %v3753_v51 }
 0x19a   : > { %v3799_v7 = vpop.permute.xlu1 %1264  ;;  %v3801_v58 = vpop.permute.xlu0 %1268 }
 0x19c   : > { %748 = vrot.lane.b32.xlu1 %v701_v20, %s2924_s30  ;;  %942 = vrot.lane.b32.xlu0 %v869_v35, %s2920_s10  ;;  %v702_v20 = vcombine.high %v698_v12, %v4593_v0  ;;  %v3826_v35 = vrot.slane %v2007_v10, %v3251_v62  ;;  %v1999_v12 = vrot.slane %v1991_v15, %v3251_v62 }
 0x19d   : > { %v939_v10 = vcombine.high %v929_v28, %v4593_v0 }
 0x19e   : > { %v3812_v16 = vpop.permute.xlu1 %1272  ;;  %v3814_v21 = vpop.permute.xlu0 %2207  ;;  %v2024_v5 = vcombine.high %v1999_v12, %v3826_v35 }
 0x19f   : > { %4624 = vst [vmem:[#allocation24_spill] sm:$0xff] %v3814_v21  ;;  %v1300_v18 = vcombine.low %v3799_v7, %v3812_v16 }
 0x1a0   : > { %978 = vrot.lane.b32.xlu1 %v938_v46, %s2922_s19  ;;  %720 = vrot.lane.b32.xlu0 %v633_v11, %s2924_s30  ;;  %v1584_v11 = vcombine.low %v3621_v13, %v3646_v63  ;;  %v1284_v46 = vcombine.low %v3789_v55, %v3801_v58 }
 0x1a1   : > { %v3849_v15 = vrot.slane %v1300_v18, %v3251_v62  ;;  %v2075_v18 = vcombine.low %v3692_v41, %v3710_v6 }
 0x1a2   : > { %v3830_v56 = vpop.permute.xlu1 %2211  ;;  %v3832_v44 = vpop.permute.xlu0 %2215  ;;  %v3859_v28 = vrot.slane %v1284_v46, %v3251_v62 }
 0x1a3   : > { %4625 = vst [vmem:[#allocation25_spill] sm:$0xff] %v3830_v56  ;;  %4626 = vst [vmem:[#allocation26_spill] sm:$0xff] %v3832_v44 }
 0x1a4   : > { %756 = vrot.lane.b32.xlu1 %v702_v20, %s2925_s22  ;;  %950 = vrot.lane.b32.xlu0 %v870_v36, %s2922_s19  ;;  %v1592_v36 = vrot.slane %v1584_v11, %v3251_v62  ;;  %v1317_v11 = vcombine.high %v3859_v28, %v3849_v15 }
 0x1a6   : > { %v3851_v21 = vpop.permute.xlu1 %2219  ;;  %v3853_v20 = vpop.permute.xlu0 %2205  ;;  %v1616_v44 = vcombine.low %v1592_v36, %v1608_v60  ;;  %v1617_v42 = vcombine.high %v1592_v36, %v1608_v60 }
 0x1a7   : > { %4627 = vst [vmem:[#allocation27_spill] sm:$0xff] %v3851_v21  ;;  %4628 = vst [vmem:[#allocation28_spill] sm:$0xff] %v3853_v20  ;;  %v1540_v20 = vrot.slane %v1532_v59, %v3251_v62  ;;  %v1524_v21 = vrot.slane %v1516_v48, %v3251_v62  ;;  %v3884_v59 = vrot.slane %v2075_v18, %v3251_v62 }
 0x1a8   : > { %986 = vrot.lane.b32.xlu1 %v939_v10, %s2924_s30  ;;  %728 = vrot.lane.b32.xlu0 %v634_v3, %s2925_s22  ;;  %v3875_v10 = vrot.slane %v2024_v5, %v3465_v40  ;;  %v2059_v3 = vcombine.low %v3673_v37, %v3694_v25  ;;  %v1368_v5 = vcombine.low %v3776_v53, %v3787_v31 }
 0x1a9   : > { %v3895_v48 = vrot.slane %v1317_v11, %v3465_v40  ;;  %v1631_v18 = vrot.slane %v1617_v42, %v3465_v40  ;;  %v2023_v11 = vcombine.low %v1999_v12, %v3826_v35  ;;  %v1601_v35 = vcombine.high %v3644_v61, %v3671_v22 }
 0x1aa   : > { %v3870_v56 = vpop.permute.xlu1 %2209  ;;  %v3872_v46 = vpop.permute.xlu0 %2213  ;;  %v3901_v60 = vrot.slane %v2059_v3, %v3251_v62  ;;  %v1549_v42 = vcombine.high %v1524_v21, %v1540_v20  ;;  %v2076_v22 = vcombine.high %v3692_v41, %v3710_v6  ;;  %v1316_v6 = vcombine.low %v3859_v28, %v3849_v15 }
 0x1ab   : > { %4629 = vst [vmem:[#allocation29_spill] sm:$0xff] %v3870_v56  ;;  %4630 = vst [vmem:[#allocation30_spill] sm:$0xff] %v3872_v46  ;;  %v940_v46 = vcombine.high %v3731_v19, %v4593_v0  ;;  %v1548_v56 = vcombine.low %v1524_v21, %v1540_v20  ;;  %v1352_v19 = vcombine.low %v3766_v9, %v3778_v4 }
 0x1ac   : > { %958 = vrot.lane.b32.xlu1 %v871_v2, %s2924_s30  ;;  %2132 = vrot.lane.b32.xlu0 %v3875_v10, %s2919_s7  ;;  %v3898_v2 = vrot.slane %v1616_v44, %v3465_v40  ;;  %v2092_v36 = vcombine.high %v3901_v60, %v3884_v59  ;;  %v1376_v44 = vrot.slane %v1368_v5, %v3251_v62 }
 0x1ad   : > { %v1360_v39 = vrot.slane %v1352_v19, %v3251_v62  ;;  %v3937_v19 = vrot.slane %v2023_v11, %v3465_v40  ;;  %v3945_v61 = vrot.slane %v1601_v35, %v3251_v62  ;;  %v1563_v11 = vrot.slane %v1549_v42, %v3465_v40 }
 0x1ae   : > { %v3890_v49 = vpop.permute.xlu1 %2217  ;;  %v3892_v38 = vpop.permute.xlu0 %461  ;;  %4633 = vst [vmem:[#allocation33_spill] sm:$0xff] %v3898_v2  ;;  %v3928_v12 = vrot.slane %v2092_v36, %v3465_v40  ;;  %v2060_v35 = vcombine.high %v3673_v37, %v3694_v25  ;;  %v3969_v41 = vrot.slane %v2076_v22, %v3251_v62  ;;  %v2091_v15 = vcombine.low %v3901_v60, %v3884_v59 }
 0x1af   : > { %4631 = vst [vmem:[#allocation31_spill] sm:$0xff] %v3890_v49  ;;  %4632 = vst [vmem:[#allocation32_spill] sm:$0xff] %v3892_v38  ;;  %v4634_v38 = vmov 0.0   ;;  %v1384_v5 = vcombine.low %v1360_v39, %v1376_v44  ;;  %v1385_v21 = vcombine.high %v1360_v39, %v1376_v44 }
 0x1b0   : > { %994 = vrot.lane.b32.xlu1 %v940_v46, %s2925_s22  ;;  %1425 = vrot.lane.b32.xlu0 %v3895_v48, %s2919_s7  ;;  %v1648_v49 = vcombine.high %v3898_v2, %v4634_v38  ;;  %v3920_v46 = vrot.slane %v1548_v56, %v3465_v40  ;;  %v3979_v25 = vrot.slane %v2060_v35, %v3251_v62 }
 0x1b1   : > { %v3992_v35 = vrot.slane %v1316_v6, %v3465_v40  ;;  %v1517_v6 = vcombine.high %v3712_v8, %v3727_v29  ;;  %v2008_v29 = vcombine.high %v3751_v14, %v3764_v43 }
 0x1b2   : > { %v3913_v0 = vpop.permute.xlu1 %489  ;;  %v3915_v3 = vpop.permute.xlu0 %485  ;;  %v1580_v56 = vcombine.high %v3920_v46, %v4634_v38  ;;  %v2107_v28 = vcombine.low %v3979_v25, %v3969_v41 }
 0x1b3   : > { %v4043_v14 = vrot.slane %v2008_v29, %v3251_v62 }
 0x1b4   : > { %1685 = vrot.lane.b32.xlu1 %v1631_v18, %s2919_s7  ;;  %1681 = vrot.lane.b32.xlu0 %v1648_v49, %s2920_s10  ;;  %v1585_v49 = vcombine.high %v3621_v13, %v3646_v63  ;;  %v2055_v13 = vcombine.high %v3937_v19, %v4634_v38  ;;  %v3957_v63 = vrot.slane %v1384_v5, %v3465_v40 }
 0x1b5   : > { %v1399_v5 = vrot.slane %v1385_v21, %v3465_v40  ;;  %v4001_v60 = vrot.slane %v2107_v28, %v3465_v40 }
 0x1b6   : > { %v3930_v24 = vpop.permute.xlu1 %497  ;;  %v3932_v2 = vpop.permute.xlu0 %457  ;;  %v1416_v37 = vcombine.high %v3957_v63, %v4634_v38 }
 0x1b7   : > { %4635 = vst [vmem:[#allocation34_spill] sm:$0xff] %v3932_v2  ;;  %v4022_v2 = vrot.slane %v1517_v6, %v3251_v62  ;;  %v2056_v6 = vcombine.high %v3875_v10, %v4634_v38  ;;  %v1417_v10 = vcombine.high %v1399_v5, %v4634_v38 }
 0x1b8   : > { %2160 = vrot.lane.b32.xlu1 %v3928_v12, %s2919_s7  ;;  %1653 = vrot.lane.b32.xlu0 %v1580_v56, %s2920_s10  ;;  %v3960_v56 = vrot.slane %v1585_v49, %v3251_v62 }
 0x1ba   : > { %v3949_v20 = vpop.permute.xlu1 %493  ;;  %v3951_v36 = vpop.permute.xlu0 %465  ;;  %v1632_v39 = vcombine.low %v3960_v56, %v3945_v61 }
 0x1bb   : > { %4636 = vst [vmem:[#allocation35_spill] sm:$0xff] %v3951_v36  ;;  %v1348_v36 = vcombine.high %v3992_v35, %v4634_v38 }
 0x1bc   : > { %1657 = vrot.lane.b32.xlu1 %v1563_v11, %s2919_s7  ;;  %2128 = vrot.lane.b32.xlu0 %v2055_v13, %s2920_s10  ;;  %v1640_v49 = vrot.slane %v1632_v39, %v3465_v40  ;;  %v1649_v13 = vcombine.high %v1631_v18, %v4634_v38  ;;  %v1533_v39 = vcombine.high %v3725_v34, %v3740_v30 }
 0x1bd   : > { %v4006_v18 = vrot.slane %v2091_v15, %v3465_v40  ;;  %v1581_v15 = vcombine.high %v1563_v11, %v4634_v38  ;;  %v2124_v11 = vcombine.high %v3928_v12, %v4634_v38 }
 0x1be   : > { %v1216_v44 = vpop.permute.xlu1 %1215  ;;  %v3973_v42 = vpop.permute.xlu0 %1187  ;;  %v4014_v34 = vrot.slane %v1533_v39, %v3251_v62 }
 0x1bf   : > { %4637 = vst [vmem:[#allocation36_spill] sm:$0xff] %v4006_v18 }
 0x1c0   : > { %1453 = vrot.lane.b32.xlu1 %v1399_v5, %s2919_s7  ;;  %1449 = vrot.lane.b32.xlu0 %v1416_v37, %s2920_s10  ;;  %v1564_v8 = vcombine.low %v4022_v2, %v4014_v34 }
 0x1c2   : > { %v1224_v22 = vpop.permute.xlu1 %1223  ;;  %v3988_v21 = vpop.permute.xlu0 %1195 }
 0x1c4   : > { %1693 = vrot.lane.b32.xlu1 %v1640_v49, %s2921_s29  ;;  %1689 = vrot.lane.b32.xlu0 %v1649_v13, %s2922_s19  ;;  %v2123_v13 = vcombine.high %v4006_v18, %v4634_v38 }
 0x1c6   : > { %v1232_v37 = vpop.permute.xlu1 %1231  ;;  %v3998_v59 = vpop.permute.xlu0 %1183 }
 0x1c8   : > { %2168 = vrot.lane.b32.xlu1 %v4001_v60, %s2921_s29  ;;  %1421 = vrot.lane.b32.xlu0 %v1348_v36, %s2920_s10 }
 0x1ca   : > { %v1212_v30 = vpop.permute.xlu1 %1211  ;;  %v4016_v28 = vpop.permute.xlu0 %1191 }
 0x1cc   : > { %2156 = vrot.lane.b32.xlu1 %v2123_v13, %s2920_s10  ;;  %1661 = vrot.lane.b32.xlu0 %v1581_v15, %s2922_s19  ;;  %v1245_v13 = vsel %vm512_vm8, %v3549_v26, %v1212_v30  ;;  %v1992_v15 = vcombine.high %v3742_v52, %v3753_v51  ;;  %v1572_v26 = vrot.slane %v1564_v8, %v3465_v40 }
 0x1cd   : > { %v1246_v43 = vsel %vm514_vm9, %v1245_v13, %v1216_v44  ;;  %v4638_v44 = vcombine.high %v3370_v1, %v3352_v54  ;;  %v1892_v54 = vcombine.high %v3661_v57, %v4634_v38  ;;  %v1369_v1 = vcombine.high %v3776_v53, %v3787_v31 }
 0x1ce   : > { %v1220_v36 = vpop.permute.xlu1 %1219  ;;  %v4030_v39 = vpop.permute.xlu0 %1199  ;;  %v4052_v51 = vrot.slane %v1992_v15, %v3251_v62  ;;  %v1238_v57 = vsel %vm512_vm8, %v3531_v33, %v3998_v59  ;;  %v387_v53 = vcombine.high %v3631_v32, %v4634_v38  ;;  %v1844_v32 = vcombine.high %v3396_v50, %v3412_v17 }
 0x1cf   : > { %v1247_v52 = vsel %vm516_vm10, %v1246_v43, %v1220_v36  ;;  %v4060_v30 = vrot.slane %v4638_v44, %v3465_v40  ;;  %v4094_v31 = vrot.slane %v1369_v1, %v3251_v62  ;;  %v1239_v33 = vsel %vm514_vm9, %v1238_v57, %v3973_v42 }
 0x1d0   : > { %2164 = vrot.lane.b32.xlu1 %v2124_v11, %s2922_s19  ;;  %2136 = vrot.lane.b32.xlu0 %v2056_v6, %s2922_s19  ;;  %v2039_v5 = vcombine.low %v4052_v51, %v4043_v14  ;;  %v1248_v8 = vsel %vm518_vm11, %v1247_v52, %v1224_v22  ;;  %v1650_v11 = vcombine.high %v1640_v49, %v4634_v38 }
 0x1d1   : > { %v1240_v59 = vsel %vm516_vm10, %v1239_v33, %v4016_v28  ;;  %v872_v44 = vcombine.high %v3746_v47, %v4634_v38  ;;  %v1349_v42 = vcombine.high %v3895_v48, %v4634_v38  ;;  %v4128_v17 = vrot.slane %v1844_v32, %v3251_v62 }
 0x1d2   : > { %v1228_v12 = vpop.permute.xlu1 %1227  ;;  %v4046_v18 = vpop.permute.xlu0 %469  ;;  %v4080_v49 = vrot.slane %v2039_v5, %v3465_v40  ;;  %v1241_v50 = vsel %vm518_vm11, %v1240_v59, %v3988_v21  ;;  %v1633_v47 = vcombine.high %v3960_v56, %v3945_v61  ;;  %v526_v48 = vsel %vm512_vm8, %v3479_v45, %v3915_v3 }
 0x1d3   : > { %v1249_v6 = vsel %vm520_vm12, %v1248_v8, %v1228_v12  ;;  %v1353_v12 = vcombine.high %v3766_v9, %v3778_v4  ;;  %v2125_v4 = vcombine.high %v4001_v60, %v4634_v38  ;;  %v1582_v1 = vcombine.high %v1572_v26, %v4634_v38 }
 0x1d4   : > { %1457 = vrot.lane.b32.xlu1 %v1417_v10, %s2922_s19  ;;  %1665 = vrot.lane.b32.xlu0 %v1572_v26, %s2921_s29  ;;  %v1250_v22 = vsel %vm522_vm13, %v1249_v6, %v1232_v37  ;;  %v1285_v3 = vcombine.high %v3789_v55, %v3801_v58  ;;  %v1824_v58 = vcombine.high %v4060_v30, %v4634_v38 }
 0x1d5   : > { %v4103_v52 = vrot.slane %v1353_v12, %v3251_v62  ;;  %v2057_v32 = vcombine.high %v4080_v49, %v4634_v38 }
 0x1d6   : > { %v4065_v29 = vpop.permute.xlu1 %501  ;;  %v1204_v36 = vpop.permute.xlu0 %1203 }
 0x1d7   : > { %v1400_v60 = vcombine.low %v4103_v52, %v4094_v31 }
 0x1d8   : > { %1697 = vrot.lane.b32.xlu1 %v1650_v11, %s2924_s30  ;;  %1900 = vrot.lane.b32.xlu0 %v4060_v30, %s2919_s7  ;;  %v1828_v11 = vcombine.high %v3384_v23, %v3393_v27  ;;  %v1242_v23 = vsel %vm520_vm12, %v1241_v50, %v4030_v39  ;;  %v1301_v27 = vcombine.high %v3799_v7, %v3812_v16 }
 0x1d9   : > { %v1243_v21 = vsel %vm522_vm13, %v1242_v23, %v1204_v36  ;;  %v527_v7 = vsel %vm514_vm9, %v526_v48, %v3913_v0  ;;  %v1647_v0 = vrot.slane %v1633_v47, %v3465_v40  ;;  %v2108_v30 = vcombine.high %v3979_v25, %v3969_v41 }
 0x1da   : > { %v1236_v13 = vpop.permute.xlu1 %1235  ;;  %v4077_v15 = vpop.permute.xlu0 %473  ;;  %v4145_v61 = vrot.slane %v1828_v11, %v3251_v62  ;;  %v528_v56 = vsel %vm516_vm10, %v527_v7, %v3949_v20  ;;  %v4159_v26 = vrot.slane %v1301_v27, %v3251_v62  ;;  %v1565_v25 = vcombine.high %v4022_v2, %v4014_v34 }
 0x1db   : > { %v1251_v43 = vsel %vm524_vm14, %v1250_v22, %v1236_v13  ;;  %v4169_v22 = vrot.slane %v1285_v3, %v3251_v62  ;;  %v529_v20 = vsel %vm518_vm11, %v528_v56, %v3930_v24  ;;  %v4639_v13 = vld [vmem:[#allocation13_spill] sm:$0xff]  ;;  %v2040_v27 = vcombine.high %v4052_v51, %v4043_v14 }
 0x1dc   : > { %v1255_v10 = vrot.slane %v1251_v43, 4  ;;  %1932 = vrot.lane.b32.xlu1 %v1892_v54, %s2922_s19  ;;  %2140 = vrot.lane.b32.xlu0 %v4080_v49, %s2921_s29  ;;  %v1408_v54 = vrot.slane %v1400_v60, %v3465_v40  ;;  %v1875_v39 = vcombine.low %v4145_v61, %v4128_v17  ;;  %v4640_v43 = vld [vmem:[#allocation15_spill] sm:$0xff]  ;;  %v2122_v49 = vrot.slane %v2108_v30, %v3465_v40  ;;  %v4646_v30 = vld [vmem:[#allocation24_spill] sm:$0xff] }
 0x1dd   : > { %v1776_v12 = vcombine.high %v4640_v43, %v4639_v13  ;;  %v1579_v34 = vrot.slane %v1565_v25, %v3465_v40  ;;  %v1401_v14 = vcombine.high %v4103_v52, %v4094_v31  ;;  %v1876_v52 = vcombine.high %v4145_v61, %v4128_v17  ;;  %v4647_v17 = vld [vmem:[#allocation20_spill] sm:$0xff] }
 0x1de   : > { %1259 = vst [vmem:[#allocation3 + $0x18] sm:$0xf0] %v1255_v10  ;;  %v4096_v37 = vpop.permute.xlu1 %1924  ;;  %v4098_v9 = vpop.permute.xlu0 %1896  ;;  %v530_v10 = vsel %vm520_vm12, %v529_v20, %v4065_v29  ;;  %v1883_v57 = vrot.slane %v1875_v39, %v3465_v40  ;;  %v4642_v29 = vld [vmem:[#allocation16_spill] sm:$0xff]  ;;  %v1418_v2 = vcombine.high %v1408_v54, %v4634_v38  ;;  %v2126_v39 = vcombine.high %v2122_v49, %v4634_v38  ;;  %v4644_v20 = vld [vmem:[#allocation25_spill] sm:$0xff] }
 0x1df   : > { %v4195_v41 = vrot.slane %v1776_v12, %v3251_v62  ;;  %v1583_v31 = vcombine.high %v1579_v34, %v4634_v38 }
 0x1e0   : > { %2172 = vrot.lane.b32.xlu1 %v2125_v4, %s2924_s30  ;;  %481 = vrot.lane.b32.xlu0 %v387_v53, %s2925_s22  ;;  %v1332_v53 = vcombine.low %v4169_v22, %v4159_v26  ;;  %v1893_v7 = vcombine.high %v1883_v57, %v4634_v38 }
 0x1e2   : > { %v506_v5 = vpop.permute.xlu1 %505  ;;  %v4117_v8 = vpop.permute.xlu0 %477  ;;  %v1340_v11 = vrot.slane %v1332_v53, %v3465_v40 }
 0x1e3   : > { %v531_v24 = vsel %vm522_vm13, %v530_v10, %v506_v5  ;;  %v1415_v10 = vrot.slane %v1401_v14, %v3465_v40  ;;  %v4653_v14 = vld [vmem:[#allocation28_spill] sm:$0xff] }
 0x1e4   : > { %966 = vrot.lane.b32.xlu1 %v872_v44, %s2925_s22  ;;  %1429 = vrot.lane.b32.xlu0 %v1349_v42, %s2922_s19  ;;  %v4641_v44 = vld [vmem:[#allocation14_spill] sm:$0xff] }
 0x1e5   : > { %v1760_v60 = vcombine.high %v4642_v29, %v4641_v44  ;;  %v1890_v29 = vrot.slane %v1876_v52, %v3465_v40 }
 0x1e6   : > { %v1208_v28 = vpop.permute.xlu1 %1207  ;;  %v4140_v6 = vpop.permute.xlu0 %716 }
 0x1e7   : > { %v1244_v45 = vsel %vm524_vm14, %v1243_v21, %v1208_v28  ;;  %v4204_v50 = vrot.slane %v1760_v60, %v3251_v62 }
 0x1e8   : > { %v1254_v16 = vrot.slane %v1244_v45, 4  ;;  %1461 = vrot.lane.b32.xlu1 %v1408_v54, %s2921_s29  ;;  %1669 = vrot.lane.b32.xlu0 %v1582_v1, %s2924_s30  ;;  %v1651_v1 = vcombine.high %v1647_v0, %v4634_v38 }
 0x1e9   : > { %v1807_v23 = vcombine.low %v4204_v50, %v4195_v41 }
 0x1ea   : > { %1258 = vst [vmem:[#allocation3 + $0x10] sm:$0xf0] %v1254_v16  ;;  %v4161_v36 = vpop.permute.xlu1 %1928  ;;  %v4163_v55 = vpop.permute.xlu0 %946  ;;  %v2054_v16 = vrot.slane %v2040_v27, %v3465_v40 }
 0x1eb   : > { %v1815_v45 = vrot.slane %v1807_v23, %v3465_v40 }
 0x1ec   : > { %1701 = vrot.lane.b32.xlu1 %v1647_v0, %s2923_s20  ;;  %1904 = vrot.lane.b32.xlu0 %v1824_v58, %s2922_s19  ;;  %v1350_v0 = vcombine.high %v1340_v11, %v4634_v38  ;;  %v4643_v58 = vld [vmem:[#allocation27_spill] sm:$0xff] }
 0x1ed   : > { %v2313_v13 = vcombine.low %v4644_v20, %v4643_v58  ;;  %v1825_v44 = vcombine.high %v1815_v45, %v4634_v38 }
 0x1ee   : > { %v510_v4 = vpop.permute.xlu1 %509  ;;  %v4185_v33 = vpop.permute.xlu0 %724 }
 0x1ef   : > { %v532_v59 = vsel %vm524_vm14, %v531_v24, %v510_v4  ;;  %v1333_v24 = vcombine.high %v4169_v22, %v4159_v26  ;;  %v4253_v4 = vrot.slane %v2313_v13, %v3251_v62  ;;  %v2058_v26 = vcombine.high %v2054_v16, %v4634_v38 }
 0x1f0   : > { %534 = vst [vmem:[#allocation3 + $0x8] sm:$0xf] %v532_v59  ;;  %1936 = vrot.lane.b32.xlu1 %v1883_v57, %s2921_s29  ;;  %2144 = vrot.lane.b32.xlu0 %v2057_v32, %s2924_s30  ;;  %v4645_v57 = vld [vmem:[#allocation26_spill] sm:$0xff]  ;;  %v1808_v22 = vcombine.high %v4204_v50, %v4195_v41 }
 0x1f1   : > { %v2297_v53 = vcombine.low %v4646_v30, %v4645_v57  ;;  %v4652_v50 = vld [vmem:[#allocation30_spill] sm:$0xff] }
 0x1f2   : > { %v737_v5 = vpop.permute.xlu1 %736  ;;  %v4199_v42 = vpop.permute.xlu0 %954  ;;  %v1822_v13 = vrot.slane %v1808_v22, %v3465_v40 }
 0x1f3   : > { %v4260_v60 = vrot.slane %v2297_v53, %v3251_v62 }
 0x1f4   : > { %2176 = vrot.lane.b32.xlu1 %v2122_v49, %s2923_s20  ;;  %1433 = vrot.lane.b32.xlu0 %v1340_v11, %s2921_s29  ;;  %v4648_v49 = vld [vmem:[#allocation31_spill] sm:$0xff]  ;;  %v4649_v11 = vld [vmem:[#allocation29_spill] sm:$0xff] }
 0x1f5   : > { %v2329_v25 = vcombine.low %v4260_v60, %v4253_v4 }
 0x1f6   : > { %v4208_v47 = vpop.permute.xlu1 %708  ;;  %v4210_v48 = vpop.permute.xlu0 %990 }
 0x1f8   : > { %1465 = vrot.lane.b32.xlu1 %v1418_v2, %s2924_s30  ;;  %1673 = vrot.lane.b32.xlu0 %v1579_v34, %s2923_s20  ;;  %v2245_v2 = vcombine.low %v4649_v11, %v4648_v49 }
 0x1fa   : > { %v745_v21 = vpop.permute.xlu1 %744  ;;  %v4220_v28 = vpop.permute.xlu0 %962 }
 0x1fc   : > { %1705 = vrot.lane.b32.xlu1 %v1651_v1, %s2925_s22  ;;  %1908 = vrot.lane.b32.xlu0 %v1815_v45, %s2921_s29  ;;  %v1347_v1 = vrot.slane %v1333_v24, %v3465_v40  ;;  %v4650_v45 = vld [vmem:[#allocation21_spill] sm:$0xff]  ;;  %v4293_v24 = vrot.slane %v2329_v25, %v3465_v40  ;;  %v4654_v25 = vld [vmem:[#allocation22_spill] sm:$0xff] }
 0x1fe   : > { %v4226_v54 = vpop.permute.xlu1 %974  ;;  %v733_v3 = vpop.permute.xlu0 %732 }
 0x1ff   : > { %v766_v61 = vsel %vm512_vm8, %v4647_v17, %v733_v3  ;;  %v1894_v17 = vcombine.high %v1890_v29, %v4634_v38 }
 0x200   : > { %1940 = vrot.lane.b32.xlu1 %v1893_v7, %s2924_s30  ;;  %2148 = vrot.lane.b32.xlu0 %v2054_v16, %s2923_s20  ;;  %v767_v34 = vsel %vm514_vm9, %v766_v61, %v737_v5  ;;  %v4651_v16 = vld [vmem:[#allocation23_spill] sm:$0xff] }
 0x202   : > { %v753_v51 = vpop.permute.xlu1 %752  ;;  %v705_v56 = vpop.permute.xlu0 %704 }
 0x203   : > { %v759_v3 = vsel %vm512_vm8, %v4650_v45, %v705_v56  ;;  %v4287_v56 = vrot.slane %v2245_v2, %v3251_v62  ;;  %v1826_v45 = vcombine.high %v1822_v13, %v4634_v38 }
 0x204   : > { %2180 = vrot.lane.b32.xlu1 %v2126_v39, %s2925_s22  ;;  %1437 = vrot.lane.b32.xlu0 %v1350_v0, %s2924_s30  ;;  %v2229_v39 = vcombine.low %v4653_v14, %v4652_v50  ;;  %v1419_v0 = vcombine.high %v1415_v10, %v4634_v38 }
 0x206   : > { %v4240_v43 = vpop.permute.xlu1 %982  ;;  %v741_v12 = vpop.permute.xlu0 %740 }
 0x207   : > { %v768_v7 = vsel %vm516_vm10, %v767_v34, %v741_v12  ;;  %v760_v12 = vsel %vm514_vm9, %v759_v3, %v4208_v47 }
 0x208   : > { %1469 = vrot.lane.b32.xlu1 %v1415_v10, %s2923_s20  ;;  %1677 = vrot.lane.b32.xlu0 %v1583_v31, %s2925_s22  ;;  %v769_v31 = vsel %vm518_vm11, %v768_v7, %v745_v21  ;;  %v2237_v10 = vrot.slane %v2229_v39, %v3251_v62  ;;  %v1351_v39 = vcombine.high %v1347_v1, %v4634_v38 }
 0x20a   : > { %v971_v32 = vpop.permute.xlu1 %970  ;;  %v713_v59 = vpop.permute.xlu0 %712  ;;  %v2261_v47 = vcombine.low %v2237_v10, %v4287_v56 }
 0x20b   : > { %v1004_v2 = vsel %vm512_vm8, %v4654_v25, %v971_v32  ;;  %v2330_v32 = vcombine.high %v4260_v60, %v4253_v4 }
 0x20c   : > { %1912 = vrot.lane.b32.xlu1 %v1825_v44, %s2924_s30  ;;  %1944 = vrot.lane.b32.xlu0 %v1890_v29, %s2923_s20  ;;  %v761_v44 = vsel %vm516_vm10, %v760_v12, %v713_v59  ;;  %v2361_v59 = vcombine.high %v4293_v24, %v4634_v38  ;;  %v1005_v3 = vsel %vm514_vm9, %v1004_v2, %v4226_v54 }
 0x20d   : > { %v762_v21 = vsel %vm518_vm11, %v761_v44, %v4140_v6  ;;  %v2344_v54 = vrot.slane %v2330_v32, %v3465_v40 }
 0x20e   : > { %v749_v23 = vpop.permute.xlu1 %748  ;;  %v943_v27 = vpop.permute.xlu0 %942 }
 0x20f   : > { %v997_v41 = vsel %vm512_vm8, %v4651_v16, %v943_v27 }
 0x210   : > { %2152 = vrot.lane.b32.xlu1 %v2058_v26, %s2925_s22  ;;  %1441 = vrot.lane.b32.xlu0 %v1347_v1, %s2923_s20  ;;  %v998_v5 = vsel %vm514_vm9, %v997_v41, %v4163_v55  ;;  %v770_v55 = vsel %vm520_vm12, %v769_v31, %v749_v23  ;;  %v2246_v1 = vcombine.high %v4649_v11, %v4648_v49 }
 0x211   : > { %v771_v26 = vsel %vm522_vm13, %v770_v55, %v753_v51  ;;  %v2314_v51 = vcombine.high %v4644_v20, %v4643_v58  ;;  %v2298_v58 = vcombine.high %v4646_v30, %v4645_v57  ;;  %v2230_v49 = vcombine.high %v4653_v14, %v4652_v50 }
 0x212   : > { %v979_v52 = vpop.permute.xlu1 %978  ;;  %v721_v53 = vpop.permute.xlu0 %720  ;;  %v2362_v50 = vcombine.high %v2344_v54, %v4634_v38 }
 0x213   : > { %v763_v34 = vsel %vm520_vm12, %v762_v21, %v721_v53  ;;  %v1006_v20 = vsel %vm516_vm10, %v1005_v3, %v979_v52  ;;  %v2312_v12 = vrot.slane %v2298_v58, %v3251_v62 }
 0x214   : > { %1473 = vrot.lane.b32.xlu1 %v1419_v0, %s2925_s22  ;;  %1916 = vrot.lane.b32.xlu0 %v1822_v13, %s2923_s20  ;;  %v764_v16 = vsel %vm522_vm13, %v763_v34, %v4185_v33  ;;  %v2328_v33 = vrot.slane %v2314_v51, %v3251_v62  ;;  %v1007_v57 = vsel %vm518_vm11, %v1006_v20, %v4240_v43 }
 0x216   : > { %v757_v61 = vpop.permute.xlu1 %756  ;;  %v951_v22 = vpop.permute.xlu0 %950  ;;  %v2345_v11 = vcombine.low %v2312_v12, %v2328_v33 }
 0x217   : > { %v772_v23 = vsel %vm524_vm14, %v771_v26, %v757_v61  ;;  %v999_v29 = vsel %vm516_vm10, %v998_v5, %v951_v22  ;;  %v2262_v5 = vcombine.high %v2237_v10, %v4287_v56  ;;  %v2260_v56 = vrot.slane %v2246_v1, %v3251_v62  ;;  %v4655_v26 = vld [vmem:[#allocation33_spill] sm:$0xff] }
 0x218   : > { %v776_v27 = vrot.slane %v772_v23, 4  ;;  %1948 = vrot.lane.b32.xlu1 %v1894_v17, %s2925_s22  ;;  %2394 = vrot.lane.b32.xlu0 %v2361_v59, %s2920_s10  ;;  %v1000_v6 = vsel %vm518_vm11, %v999_v29, %v4199_v42  ;;  %v4327_v42 = vrot.slane %v2261_v47, %v3465_v40  ;;  %v2244_v17 = vrot.slane %v2230_v49, %v3251_v62 }
 0x219   : > { %v2276_v10 = vrot.slane %v2262_v5, %v3465_v40  ;;  %v2346_v59 = vcombine.high %v2312_v12, %v2328_v33 }
 0x21a   : > { %780 = vst [vmem:[#allocation3 + $0x8] sm:$0xf0] %v776_v27  ;;  %v987_v7 = vpop.permute.xlu1 %986  ;;  %v729_v41 = vpop.permute.xlu0 %728  ;;  %v2293_v13 = vcombine.high %v4327_v42, %v4634_v38  ;;  %v2278_v51 = vcombine.high %v2244_v17, %v2260_v56 }
 0x21b   : > { %v765_v4 = vsel %vm524_vm14, %v764_v16, %v729_v41  ;;  %v1008_v31 = vsel %vm520_vm12, %v1007_v57, %v987_v7  ;;  %v2294_v61 = vcombine.high %v2276_v10, %v4634_v38  ;;  %v2360_v16 = vrot.slane %v2346_v59, %v3465_v40 }
 0x21c   : > { %v775_v60 = vrot.slane %v765_v4, 4  ;;  %1445 = vrot.lane.b32.xlu1 %v1351_v39, %s2925_s22  ;;  %1920 = vrot.lane.b32.xlu0 %v1826_v45, %s2925_s22  ;;  %v1009_v44 = vsel %vm522_vm13, %v1008_v31, %v4210_v48  ;;  %v2353_v48 = vrot.slane %v2345_v11, %v3465_v40  ;;  %v2292_v4 = vrot.slane %v2278_v51, %v3465_v40 }
 0x21e   : > { %779 = vst [vmem:[#allocation3] sm:$0xf0] %v775_v60  ;;  %v959_v30 = vpop.permute.xlu1 %958  ;;  %v2133_v0 = vpop.permute.xlu0 %2132  ;;  %v2363_v23 = vcombine.high %v2353_v48, %v4634_v38  ;;  %v2364_v60 = vcombine.high %v2360_v16, %v4634_v38  ;;  %v2296_v5 = vcombine.high %v2292_v4, %v4634_v38 }
 0x21f   : > { %v1001_v52 = vsel %vm520_vm12, %v1000_v6, %v959_v30 }
 0x220   : > { %2366 = vrot.lane.b32.xlu1 %v2293_v13, %s2920_s10  ;;  %2398 = vrot.lane.b32.xlu0 %v2344_v54, %s2919_s7  ;;  %v4353_v43 = vsel %vm522_vm13, %v1001_v52, %v4220_v28  ;;  %v2277_v28 = vcombine.low %v2244_v17, %v2260_v56  ;;  %v4656_v56 = vld [vmem:[#allocation34_spill] sm:$0xff] }
 0x221   : > { %v2439_v29 = vld [vmem:[#allocation3 + $0x8] sm:$0xff] }
 0x222   : > { %v995_v53 = vpop.permute.xlu1 %994  ;;  %v1426_v55 = vpop.permute.xlu0 %1425  ;;  %v2285_v34 = vrot.slane %v2277_v28, %v3465_v40 }
 0x223   : > { %v1010_v14 = vsel %vm524_vm14, %v1009_v44, %v995_v53  ;;  %v4657_v53 = vld [vmem:[#allocation17_spill] sm:$0xff] }
 0x224   : > { %1012 = vst [vmem:[#allocation3 + $0x18] sm:$0xf] %v1010_v14  ;;  %2370 = vrot.lane.b32.xlu1 %v2276_v10, %s2919_s7  ;;  %2402 = vrot.lane.b32.xlu0 %v2362_v50, %s2922_s19  ;;  %v2295_v7 = vcombine.high %v2285_v34, %v4634_v38  ;;  %v513_v44 = vsel %vm512_vm8, %v4657_v53, %v4656_v56  ;;  %v4658_v10 = vld [vmem:[#allocation32_spill] sm:$0xff]  ;;  %v4659_v14 = vld [vmem:[#allocation35_spill] sm:$0xff]  ;;  %s2841_s7 = sshll.u32 %s2926_s4, 4  ;;  %s2842_s7 = int_to_ptr.vmem [resolvable:$false] %s2841_s7 }
 0x225   : > { %s2843_s10 = scalar_lea.vmem %s2842_s7, 512  ;;  %p2844_p5 = scmp.lt.s32.totalorder %s4521_s8, %s2842_s7 }
 0x226   : > { %v1686_v47 = vpop.permute.xlu1 %1685  ;;  %v1682_v21 = vpop.permute.xlu0 %1681  ;;  %p2845_p0 = scmp.lt.s32.totalorder %s2843_s10, %s2837_s26 }
 0x227   : > { %v1715_v22 = vsel %vm512_vm8, %v4655_v26, %v1682_v21 }
 0x228   : > { %2374 = vrot.lane.b32.xlu1 %v2294_v61, %s2922_s19  ;;  %2406 = vrot.lane.b32.xlu0 %v2353_v48, %s2921_s29  ;;  %v4371_v62 = vsel %vm514_vm9, %v1715_v22, %v1686_v47  ;;  %p2846_p6 = por %p2845_p0, %p2844_p5 }
 0x22a   : > { %v4373_v25 = vpop.permute.xlu1 %2160  ;;  %v1654_v2 = vpop.permute.xlu0 %1653  ;;  %p2847_p13 = pnand %p2846_p6, %p2840_p4 }
 0x22b   : > { %v2441_v27 = vld [vmem:[#allocation3 + $0x18] sm:$0xff]  ;;  %v1708_v32 = vsel %vm512_vm8, %v3920_v46, %v1654_v2 }
 0x22c   : > { %2378 = vrot.lane.b32.xlu1 %v2285_v34, %s2921_s29  ;;  %2410 = vrot.lane.b32.xlu0 %v2363_v23, %s2924_s30  ;;  %v2691_v6 = vpack.c.bf16 %v2441_v27, %v2439_v29 }
 0x22e   : > { %v1658_v45 = vpop.permute.xlu1 %1657  ;;  %2692 = vmatprep.subr.bf16.mxu0 %v2691_v6  ;;  %v2129_v3 = vpop.permute.xlu0 %2128 }
 0x22f   : > { %v4384_v41 = vsel %vm514_vm9, %v1708_v32, %v1658_v45  ;;  %v2183_v39 = vsel %vm512_vm8, %v3937_v19, %v2129_v3 }
 0x230   : > { %2382 = vrot.lane.b32.xlu1 %v2295_v7, %s2924_s30  ;;  %2414 = vrot.lane.b32.xlu0 %v2360_v16, %s2923_s20  ;;  %v4391_v58 = vsel %vm514_vm9, %v2183_v39, %v2133_v0  ;;  %v4660_v39 = vld [vmem:[#allocation36_spill] sm:$0xff] }
 0x232   : > { %v1454_v46 = vpop.permute.xlu1 %1453  ;;  %v1450_v20 = vpop.permute.xlu0 %1449 }
 0x233   : > { %v1483_v33 = vsel %vm512_vm8, %v3957_v63, %v1450_v20 }
 0x234   : > { %2386 = vrot.lane.b32.xlu1 %v2292_v4, %s2923_s20  ;;  %2418 = vrot.lane.b32.xlu0 %v2364_v60, %s2925_s22  ;;  %v4400_v19 = vsel %vm514_vm9, %v1483_v33, %v1454_v46 }
 0x236   : > { %v1694_v54 = vpop.permute.xlu1 %1693  ;;  %v1690_v1 = vpop.permute.xlu0 %1689 }
 0x237   : > { %v1717_v3 = vsel %vm516_vm10, %v4371_v62, %v1690_v1 }
 0x238   : > { %2390 = vrot.lane.b32.xlu1 %v2296_v5, %s2925_s22  ;;  %v1718_v16 = vsel %vm518_vm11, %v1717_v3, %v1694_v54 }
 0x23a   : > { %v2169_v57 = vpop.permute.xlu1 %2168  ;;  %v1422_v40 = vpop.permute.xlu0 %1421 }
 0x23b   : > { %v1476_v30 = vsel %vm512_vm8, %v3992_v35, %v1422_v40  ;;  %v515_v35 = vsel %vm514_vm9, %v513_v44, %v4658_v10 }
 0x23c   : > { %v4407_v63 = vsel %vm514_vm9, %v1476_v30, %v1426_v55  ;;  %v517_v17 = vsel %vm516_vm10, %v515_v35, %v4659_v14 }
 0x23d   : > { %v519_v28 = vsel %vm518_vm11, %v517_v17, %v4046_v18 }
 0x23e   : > { %v2157_v0 = vpop.permute.xlu1 %2156  ;;  %v1662_v13 = vpop.permute.xlu0 %1661  ;;  %v521_v47 = vsel %vm520_vm12, %v519_v28, %v4077_v15 }
 0x23f   : > { %v523_v21 = vsel %vm522_vm13, %v521_v47, %v4117_v8  ;;  %v2190_v46 = vsel %vm512_vm8, %v4660_v39, %v2157_v0  ;;  %v1710_v10 = vsel %vm516_vm10, %v4384_v41, %v1662_v13 }
 0x240   : > { %v2191_v40 = vsel %vm514_vm9, %v2190_v46, %v4373_v25 }
 0x242   : > { %v2165_v12 = vpop.permute.xlu1 %2164  ;;  %v4409_v31 = vpop.permute.xlu0 %2136 }
 0x243   : > { %v2192_v62 = vsel %vm516_vm10, %v2191_v40, %v2165_v12  ;;  %v2185_v41 = vsel %vm516_vm10, %v4391_v58, %v4409_v31 }
 0x244   : > { %v2193_v56 = vsel %vm518_vm11, %v2192_v62, %v2169_v57 }
 0x246   : > { %v4411_v52 = vpop.permute.xlu1 %1457  ;;  %v1666_v49 = vpop.permute.xlu0 %1665 }
 0x247   : > { %v1711_v25 = vsel %vm518_vm11, %v1710_v10, %v1666_v49 }
 0x24a   : > { %v1698_v11 = vpop.permute.xlu1 %1697  ;;  %v4413_v38 = vpop.permute.xlu0 %1900 }
 0x24b   : > { %v1719_v20 = vsel %vm520_vm12, %v1718_v16, %v1698_v11 }
 0x24e   : > { %v4420_v55 = vpop.permute.xlu1 %1932  ;;  %v2141_v50 = vpop.permute.xlu0 %2140 }
 0x24f   : > { %v2186_v13 = vsel %vm518_vm11, %v2185_v41, %v2141_v50 }
 0x252   : > { %v2173_v61 = vpop.permute.xlu1 %2172  ;;  %v482_v48 = vpop.permute.xlu0 %481 }
 0x253   : > { %v525_v26 = vsel %vm524_vm14, %v523_v21, %v482_v48  ;;  %v2194_v0 = vsel %vm520_vm12, %v2193_v56, %v2173_v61 }
 0x254   : > { %533 = vst [vmem:[#allocation3] sm:$0xf] %v525_v26 }
 0x256   : > { %v967_v22 = vpop.permute.xlu1 %966  ;;  %v4431_v59 = vpop.permute.xlu0 %1429 }
 0x257   : > { %v1003_v2 = vsel %vm524_vm14, %v4353_v43, %v967_v22 }
 0x258   : > { %1011 = vst [vmem:[#allocation3 + $0x10] sm:$0xf] %v1003_v2 }
 0x25a   : > { %v1462_v34 = vpop.permute.xlu1 %1461  ;;  %v1670_v18 = vpop.permute.xlu0 %1669 }
 0x25b   : > { %v2438_v15 = vld [vmem:[#allocation3] sm:$0xff]  ;;  %v1712_v12 = vsel %vm520_vm12, %v1711_v25, %v1670_v18  ;;  %v1485_v18 = vsel %vm516_vm10, %v4400_v19, %v4411_v52 }
 0x25e   : > { %v1702_v23 = vpop.permute.xlu1 %1701  ;;  %v4435_v29 = vpop.permute.xlu0 %1904 }
 0x25f   : > { %v2440_v27 = vld [vmem:[#allocation3 + $0x10] sm:$0xff]  ;;  %v1720_v4 = vsel %vm522_vm13, %v1719_v20, %v1702_v23 }
 0x260   : > { %v2693_v8 = vpack.c.bf16 %v2440_v27, %v2438_v15  ;;  %v1486_v15 = vsel %vm518_vm11, %v1485_v18, %v1462_v34 }
 0x262   : > { %v1937_v6 = vpop.permute.xlu1 %1936  ;;  %2694 = vmatpush1.bf16.msra.mxu0 %v2693_v8  ;;  %v2145_v51 = vpop.permute.xlu0 %2144  ;;  %v4661_v8 = vld [vmem:[#allocation18_spill] sm:$0xff] }
 0x263   : > { %v2187_v49 = vsel %vm520_vm12, %v2186_v13, %v2145_v51  ;;  %v1958_v58 = vsel %vm512_vm8, %v4661_v8, %v4096_v37  ;;  %v4662_v37 = vld [vmem:[#allocation19_spill] sm:$0xff]  ;;  %v2437_v8 = vld [vmem:[#allocation7] sm:$0xff] }
 0x264   : > { %v1959_v50 = vsel %vm514_vm9, %v1958_v58, %v4161_v36 }
 0x265   : > { %v1960_v19 = vsel %vm516_vm10, %v1959_v50, %v4420_v55  ;;  %v1478_v55 = vsel %vm516_vm10, %v4407_v63, %v4431_v59 }
 0x266   : > { %v2177_v32 = vpop.permute.xlu1 %2176  ;;  %v4437_v45 = vpop.permute.xlu0 %1433  ;;  %v1961_v34 = vsel %vm518_vm11, %v1960_v19, %v1937_v6 }
 0x267   : > { %v2195_v11 = vsel %vm522_vm13, %v2194_v0, %v2177_v32 }
 0x26a   : > { %v1466_v7 = vpop.permute.xlu1 %1465  ;;  %v1674_v43 = vpop.permute.xlu0 %1673 }
 0x26b   : > { %v1713_v17 = vsel %vm522_vm13, %v1712_v12, %v1674_v43  ;;  %v1487_v31 = vsel %vm520_vm12, %v1486_v15, %v1466_v7  ;;  %v1951_v7 = vsel %vm512_vm8, %v4662_v37, %v4098_v9  ;;  %v1479_v9 = vsel %vm518_vm11, %v1478_v55, %v4437_v45 }
 0x26c   : > { %v1952_v36 = vsel %vm514_vm9, %v1951_v7, %v4413_v38 }
 0x26d   : > { %v1953_v6 = vsel %vm516_vm10, %v1952_v36, %v4435_v29 }
 0x26e   : > { %v1706_v60 = vpop.permute.xlu1 %1705  ;;  %v1909_v33 = vpop.permute.xlu0 %1908 }
 0x26f   : > { %v1721_v5 = vsel %vm524_vm14, %v1720_v4, %v1706_v60  ;;  %v1954_v4 = vsel %vm518_vm11, %v1953_v6, %v1909_v33 }
 0x270   : > { %v1725_v30 = vrot.slane %v1721_v5, 4 }
 0x272   : > { %1729 = vst [vmem:[#allocation3 + $0x28] sm:$0xf0] %v1725_v30  ;;  %v1941_v1 = vpop.permute.xlu1 %1940  ;;  %v2149_v54 = vpop.permute.xlu0 %2148 }
 0x273   : > { %v2188_v26 = vsel %vm522_vm13, %v2187_v49, %v2149_v54  ;;  %v1962_v43 = vsel %vm520_vm12, %v1961_v34, %v1941_v1 }
 0x276   : > { %v2181_v53 = vpop.permute.xlu1 %2180  ;;  %v1438_v44 = vpop.permute.xlu0 %1437 }
 0x277   : > { %v2196_v35 = vsel %vm524_vm14, %v2195_v11, %v2181_v53  ;;  %v1480_v38 = vsel %vm520_vm12, %v1479_v9, %v1438_v44 }
 0x278   : > { %v2200_v14 = vrot.slane %v2196_v35, 4 }
 0x27a   : > { %2204 = vst [vmem:[#allocation3 + $0x38] sm:$0xf0] %v2200_v14  ;;  %v1470_v57 = vpop.permute.xlu1 %1469  ;;  %v1678_v28 = vpop.permute.xlu0 %1677 }
 0x27b   : > { %v1714_v47 = vsel %vm524_vm14, %v1713_v17, %v1678_v28  ;;  %v1488_v51 = vsel %vm522_vm13, %v1487_v31, %v1470_v57 }
 0x27c   : > { %v1724_v21 = vrot.slane %v1714_v47, 4 }
 0x27e   : > { %1728 = vst [vmem:[#allocation3 + $0x20] sm:$0xf0] %v1724_v21  ;;  %v1913_v61 = vpop.permute.xlu1 %1912  ;;  %v1945_v48 = vpop.permute.xlu0 %1944 }
 0x27f   : > { %v1963_v16 = vsel %vm522_vm13, %v1962_v43, %v1945_v48  ;;  %v1955_v60 = vsel %vm520_vm12, %v1954_v4, %v1913_v61 }
 0x282   : > { %v2153_v22 = vpop.permute.xlu1 %2152  ;;  %v1442_v2 = vpop.permute.xlu0 %1441 }
 0x283   : > { %v2189_v23 = vsel %vm524_vm14, %v2188_v26, %v2153_v22  ;;  %v1481_v5 = vsel %vm522_vm13, %v1480_v38, %v1442_v2 }
 0x284   : > { %v2199_v27 = vrot.slane %v2189_v23, 4 }
 0x286   : > { %2203 = vst [vmem:[#allocation3 + $0x30] sm:$0xf0] %v2199_v27  ;;  %v1474_v32 = vpop.permute.xlu1 %1473  ;;  %v1917_v3 = vpop.permute.xlu0 %1916 }
 0x287   : > { %v1489_v52 = vsel %vm524_vm14, %v1488_v51, %v1474_v32  ;;  %v1956_v40 = vsel %vm522_vm13, %v1955_v60, %v1917_v3 }
 0x288   : > { %1491 = vst [vmem:[#allocation3 + $0x28] sm:$0xf] %v1489_v52 }
 0x28a   : > { %v1949_v39 = vpop.permute.xlu1 %1948  ;;  %v2395_v46 = vpop.permute.xlu0 %2394 }
 0x28b   : > { %v1964_v20 = vsel %vm524_vm14, %v1963_v16, %v1949_v39  ;;  %v2428_v12 = vsel %vm512_vm8, %v4293_v24, %v2395_v46 }
 0x28c   : > { %1966 = vst [vmem:[#allocation3 + $0x38] sm:$0xf] %v1964_v20 }
 0x28e   : > { %v1446_v63 = vpop.permute.xlu1 %1445  ;;  %v1921_v59 = vpop.permute.xlu0 %1920 }
 0x28f   : > { %v1482_v29 = vsel %vm524_vm14, %v1481_v5, %v1446_v63  ;;  %v1957_v30 = vsel %vm524_vm14, %v1956_v40, %v1921_v59  ;;  %v2443_v33 = vld [vmem:[#allocation3 + $0x28] sm:$0xff] }
 0x290   : > { %1490 = vst [vmem:[#allocation3 + $0x20] sm:$0xf] %v1482_v29  ;;  %1965 = vst [vmem:[#allocation3 + $0x30] sm:$0xf] %v1957_v30 }
 0x292   : > { %v2367_v45 = vpop.permute.xlu1 %2366  ;;  %v2399_v62 = vpop.permute.xlu0 %2398 }
 0x293   : > { %v2445_v1 = vld [vmem:[#allocation3 + $0x38] sm:$0xff]  ;;  %v2429_v17 = vsel %vm514_vm9, %v2428_v12, %v2399_v62  ;;  %v2421_v61 = vsel %vm512_vm8, %v4327_v42, %v2367_v45 }
 0x294   : > { %v2695_v54 = vpack.c.bf16 %v2445_v1, %v2443_v33 }
 0x296   : > { %v2371_v56 = vpop.permute.xlu1 %2370  ;;  %2696 = vmatprep.subr.bf16.mxu0 %v2695_v54  ;;  %v2403_v0 = vpop.permute.xlu0 %2402 }
 0x297   : > { %v2442_v11 = vld [vmem:[#allocation3 + $0x20] sm:$0xff]  ;;  %v2444_v53 = vld [vmem:[#allocation3 + $0x30] sm:$0xff]  ;;  %v2430_v47 = vsel %vm516_vm10, %v2429_v17, %v2403_v0  ;;  %v2422_v41 = vsel %vm514_vm9, %v2421_v61, %v2371_v56 }
 0x298   : > { %v2697_v44 = vpack.c.bf16 %v2444_v53, %v2442_v11 }
 0x29a   : > { %v2375_v10 = vpop.permute.xlu1 %2374  ;;  %2698 = vmatpush1.bf16.msra.mxu0 %v2697_v44  ;;  %v2407_v35 = vpop.permute.xlu0 %2406 }
 0x29b   : > { %v2431_v21 = vsel %vm518_vm11, %v2430_v47, %v2407_v35  ;;  %v2423_v24 = vsel %vm516_vm10, %v2422_v41, %v2375_v10 }
 0x29e   : > { %v2379_v25 = vpop.permute.xlu1 %2378  ;;  %v2411_v14 = vpop.permute.xlu0 %2410 }
 0x29f   : > { %v2432_v48 = vsel %vm520_vm12, %v2431_v21, %v2411_v14  ;;  %v2424_v2 = vsel %vm518_vm11, %v2423_v24, %v2379_v25 }
 0x2a2   : > { %v2383_v57 = vpop.permute.xlu1 %2382  ;;  %v2415_v28 = vpop.permute.xlu0 %2414 }
 0x2a3   : > { %v2433_v13 = vsel %vm522_vm13, %v2432_v48, %v2415_v28  ;;  %v2425_v18 = vsel %vm520_vm12, %v2424_v2, %v2383_v57 }
 0x2a6   : > { %v2387_v49 = vpop.permute.xlu1 %2386  ;;  %v2419_v26 = vpop.permute.xlu0 %2418 }
 0x2a7   : > { %v2434_v22 = vsel %vm524_vm14, %v2433_v13, %v2419_v26  ;;  %v2426_v42 = vsel %vm522_vm13, %v2425_v18, %v2387_v49 }
 0x2a8   : > { %2436 = vst [vmem:[#allocation3 + $0x48] sm:$0xf] %v2434_v22 }
 0x2aa   : > { %v2391_v23 = vpop.permute.xlu1 %2390 }
 0x2ab   : > { %v2427_v15 = vsel %vm524_vm14, %v2426_v42, %v2391_v23 }
 0x2ac   : > { %2435 = vst [vmem:[#allocation3 + $0x40] sm:$0xf] %v2427_v15 }
 0x2af   : > { %v2447_v27 = vld [vmem:[#allocation3 + $0x48] sm:$0xf] }
 0x2b0   : > { %2681 = vmatprep.subr.msk.mxu0 %vm2452_vm15, %v2447_v27 }
 0x2b3   : > { %v2446_v58 = vld [vmem:[#allocation3 + $0x40] sm:$0xf] }
 0x2b4   : > { %2682 = vmatpush1.msk.msra.mxu0 %vm2452_vm15, %v2446_v58 }
 0x2b5   : > { %2683 = vmatmul.mubr.msk.f32.vlgmr.msra.gmra.mrb[0].mxu0 %vm2448_vm0, %v2437_v8 }
 0x388   : > { %v2525_v31 = vpop.f32.mrb[0].mxu0 }
 0x389   : > { %2530 = vst [vmem:[%s202_s6] sm:$0xff] %v2525_v31  ;;  %v2535_v50 = vmul.f32 %v2525_v31, %v2525_v31  ;;  %v2527_v51 = vpop.f32.mrb[1].mxu0 }
 0x38a   : > { %2531 = vst [vmem:[%s202_s6 + $0x8] sm:$0xff] %v2527_v51  ;;  %v2532_v32 = vadd.f32 %v2527_v51, %v2525_v31  ;;  %v2536_v3 = vmul.f32 %v2527_v51, %v2527_v51 }
 0x38c   : > { %v2537_v19 = vadd.f32 %v2536_v3, %v2535_v50  ;;  %2533 = vadd.xlane.f32.xlu0 %v2532_v32 }
 0x38e   : > { %2538 = vadd.xlane.f32.xlu1 %v2537_v19 }
 0x38f   : > { %2850 = shalt.err (!%p2847_p13)
}
 0x390   : > { %s2851_s29 = scalar_lea.hbm %s2560_s17, 256  ;;  %s2855_s20 = scalar_lea.hbm %s4570_s2, 512 }
 0x391   : > { %p2852_p7 = scmp.ne.s32.totalorder %s2560_s17, %s2851_s29  ;;  %p2856_p1 = scmp.lt.u32.totalorder %s2560_s17, %s4570_s2 }
 0x392   : > { %p2857_p11 = scmp.lt.u32.totalorder %s2855_s20, %s2851_s29  ;;  %p2859_p9 = scmp.lt.u32.totalorder %s2851_s29, %s2560_s17 }
 0x393   : > { %p2853_p3 = pnand %p2852_p7, %p4663_p10 }
 0x394   : > { %p2858_p8 = por %p2857_p11, %p2856_p1 }
 0x395   : > { %p2854_p12 = pneg %p2853_p3 }
 0x396   : > { %p2860_p2 = por %p2859_p9, %p2858_p8 }
 0x398   : > { %p2861_p4 = pnand %p2860_p2, %p2854_p12 }
 0x39a   : > { %2864 = shalt.err (!%p2861_p4)
}
 0x39b   : > { %2705 = dma.vmem_to_hbm [thread:$0]  (%p4663_p10), %s4521_s8, 256, %s2560_s17, %s2544_s23   ;;  %vm2541_vm2 = vcmask 15360  }
 0x39c   : > { %p210_p5 = scmp.lt.s32.totalorder %s2968_s16, 1 }
 0x39e   : > { %s4671_s16 = smov (!%p210_p5, %s2968_s16), 1 }
 0x39f   : > { %s2680_s27 = sshll.u32 %s4671_s16, 3 }
 0x3a0   : > { %s213_s28 = scalar_lea.vmem %s4571_s3, %s2680_s27 }
 0x419   : > { %v2534_v52 = vpop.xlane.xlu0 %2533 }
 0x41b   : > { %v2539_v34 = vpop.xlane.xlu1 %2538 }
 0x41c   : > { %v2540_v37 = vsel %vm239_vm1, %v2534_v52, %v2539_v34 }
 0x41d   : > { %2542 = vst.msk [vmem:[%s213_s28] sm:$0xff] %vm2541_vm2, %v2540_v37 }
 0x41e PF: > { %s2577_s24 = sand.u32 1, %s2895_s12   ;;  %p4664_p0 = scmp.ne.s32.totalorder %s4603_s25, 0 }
 0x41f   : > { %p4665_p10 = scmp.ge.s32.totalorder %s2907_s15, 2  ;;  %s2578_s8 = scalar_lea.sflag [#allocation6], %s2577_s24 }
 0x421   : > { %p2716_p6 = pnand %p4665_p10, %p4664_p0 }
 0x423   : > { %2890 = dma.done.wait (!%p2716_p6), %s2578_s8, 256  }
 0x424   : > { %2892 = vsyncadd (!%p2716_p6), %s2578_s8, 4294967040  ;;  %p18_p13 = scmp.ge.s32.totalorder %s2972_s18, 4   ;;  %s4666_s12 = smov %s2899_s13 }
 0x425   : > { %s4667_s13 = smov %s2903_s14  ;;  %s4668_s14 = smov %s2984_s21 }
 0x426   : > { %s4669_s15 = smov %s2972_s18  ;;  %20 = sbr.rel (!%p18_p13) target bundleno = 6 (0x6), region = 89 }
 0x42d   :  { %2590 = vsyncpa [#allocation5], 1 }
 0x42e   :  { %2592 = vsyncpa [#allocation5 + $0x1], 1 }
 0x42f   :  { %2593 = vsyncpa [#allocation8], 1 }
 0x430   :  { %2594 = vsyncpa [#allocation6], 1 }
 0x431   :  { %2596 = vsyncpa [#allocation6 + $0x1], 1 }

</bundles_post_ra>
